<compile_context>
chip_gen: v6e
topology: v6e:2x2x1
jax: 0.10.0
libtpu: 0.0.40
codegen_flags: <defaults>
</compile_context>

<pallas_src>
import jax
import jax.numpy as jnp
from jax.experimental import pallas as pl
from jax.experimental.pallas import tpu as pltpu
import numpy as np


def gru_kernel(x_ref, h0_ref, w_ih_ref, w_hh_ref, b_pre_ref, b_hn_ref,
               w_lin_ref, b_lin_ref, pred_ref, hT_ref):
    """Single-layer GRU over T steps + final Linear for one batch block.

    Gate-padded layout: HP = padded per-gate width (multiple of 128); gate g
    occupies lanes [g*HP, g*HP + H) of the 3*HP gate axis, padding lanes are 0.

    x_ref:     (T, Bb, D)    bf16, time-major
    h0_ref:    (Bb, HP)      f32, lanes H..HP are zero
    w_ih_ref:  (D, 3*HP)     bf16, pre-transposed + gate-padded (r, z, n)
    w_hh_ref:  (HP, 3*HP)    bf16, pre-transposed + gate-padded
    b_pre_ref: (1, 3*HP)     f32, [b_ih_r+b_hh_r, b_ih_z+b_hh_z, b_ih_n]
    b_hn_ref:  (1, HP)       f32, b_hh_n (stays inside r * (.) per PyTorch)
    w_lin_ref: (1, HP) if O == 1 else (HP, O), f32, zero in pad lanes/rows
    b_lin_ref: (1, O)        f32
    pred_ref:  (Bb, O)       f32
    hT_ref:    (Bb, HP)      f32 (lane-dense; wrapper slices back to H)
    """
    T, Bb, D = x_ref.shape
    HP = h0_ref.shape[1]

    # ---- Hoisted input projection: ONE batched MXU matmul for all T steps,
    # biases folded.  Gates land on 128-lane-aligned boundaries, so all
    # per-gate slices below are free (no XLU lane moves).
    x_flat = x_ref[...].reshape(T * Bb, D)                        # bf16
    gi_all = (jnp.dot(x_flat, w_ih_ref[...],
                      preferred_element_type=jnp.float32)
              + b_pre_ref[...]).reshape(T, Bb, 3 * HP)            # f32

    w_hh = w_hh_ref[...]
    b_hn = b_hn_ref[...]

    # ---- Recurrence: fully unrolled (T is small & compile-time known), one
    # fused gate matmul per step on the serial chain.
    # TODO(synk): for large T/Bb switch to lax.fori_loop (bounds vreg live
    # ranges) and keep w_hh resident in the MXU via pltpu.matmul_push_rhs /
    # matmul_acc_lhs instead of re-pushing the RHS every step.
    h = h0_ref[...]                                               # (Bb, HP) f32
    for t in range(T):
        gh = jnp.dot(h.astype(w_hh.dtype), w_hh,
                     preferred_element_type=jnp.float32)          # (Bb, 3*HP)
        gi = gi_all[t]                                            # (Bb, 3*HP)
        # sigmoid(x) == 0.5*(tanh(x/2)+1): 1 EUP push per vreg instead of
        # exp+reciprocal; r and z share a single fused tanh.
        rz = 0.5 * (jnp.tanh(0.5 * (gi[:, :2 * HP] + gh[:, :2 * HP])) + 1.0)
        r = rz[:, :HP]
        z = rz[:, HP:]
        n = jnp.tanh(gi[:, 2 * HP:] + r * (gh[:, 2 * HP:] + b_hn))
        h = (1.0 - z) * n + z * h

    hT_ref[...] = h                                               # lane-dense store

    if pred_ref.shape[1] == 1:
        # O == 1: VPU multiply + row-reduce beats a 1-output-lane MXU matmul.
        pred_ref[...] = (jnp.sum(h * w_lin_ref[...], axis=-1, keepdims=True)
                         + b_lin_ref[...])
    else:
        pred_ref[...] = (jnp.dot(h, w_lin_ref[...],
                                 preferred_element_type=jnp.float32)
                         + b_lin_ref[...])


def _pick_batch_block(B):
    """Largest multiple-of-8 batch block <= 256 that divides B while keeping
    >= 2 grid steps (so v7x's second TensorCore has work) once B >= 16."""
    if B % 8 != 0:
        return B
    best = 8
    for bb in range(8, min(B, 256) + 1, 8):
        if B % bb == 0 and B // bb >= 2:
            best = bb
    return best


def simple_gru_forward(x, hidden, params):
    """x: (B, C, T, D), hidden: (1, B, H). Returns (pred (B, O), hidden (1, B, H))."""
    w_ih, w_hh, b_ih, b_hh, w_lin, b_lin = params
    B, C, T, D = x.shape
    H = w_hh.shape[1]
    O = w_lin.shape[0]

    HP = ((H + 127) // 128) * 128          # padded per-gate lane width
    G = 3 * HP

    # x.permute(1,0,2,3)[0] == x[:, 0]; slice channel BEFORE transposing.
    mx_dtype = jnp.bfloat16
    x_tbd = jnp.transpose(x[:, 0], (1, 0, 2)).astype(mx_dtype)    # (T, B, D)

    # ---- Pre-transpose + gate-pad everything once in XLA (off the kernel).
    w_ih_t = jnp.transpose(w_ih).astype(jnp.float32)              # (D, 3H)
    w_hh_t = jnp.transpose(w_hh).astype(jnp.float32)              # (H, 3H)

    w_ih_pad = jnp.zeros((D, G), jnp.float32)
    w_hh_pad = jnp.zeros((HP, G), jnp.float32)
    for g in range(3):
        w_ih_pad = w_ih_pad.at[:, g * HP:g * HP + H].set(w_ih_t[:, g * H:(g + 1) * H])
        w_hh_pad = w_hh_pad.at[:H, g * HP:g * HP + H].set(w_hh_t[:, g * H:(g + 1) * H])
    w_ih_pad = w_ih_pad.astype(mx_dtype)
    w_hh_pad = w_hh_pad.astype(mx_dtype)

    # Folded biases: r/z get b_ih+b_hh; n keeps b_ih only (b_hh_n stays inside
    # the r * (...) term, matching torch.nn.GRU).
    b_r = b_ih[0:H] + b_hh[0:H]
    b_z = b_ih[H:2 * H] + b_hh[H:2 * H]
    b_n = b_ih[2 * H:3 * H]
    b_pre_pad = (jnp.zeros((1, G), jnp.float32)
                 .at[0, 0:H].set(b_r)
                 .at[0, HP:HP + H].set(b_z)
                 .at[0, 2 * HP:2 * HP + H].set(b_n))
    b_hn_pad = jnp.zeros((1, HP), jnp.float32).at[0, :H].set(b_hh[2 * H:3 * H])

    if O == 1:
        w_lin_k = jnp.zeros((1, HP), jnp.float32).at[0, :H].set(w_lin[0])
    else:
        w_lin_k = jnp.zeros((HP, O), jnp.float32).at[:H, :].set(jnp.transpose(w_lin))
    b_lin_k = b_lin.reshape(1, O).astype(jnp.float32)

    h0_pad = jnp.zeros((B, HP), jnp.float32).at[:, :H].set(hidden[0].astype(jnp.float32))

    # Batch-parallel grid (shards across TensorCores on v7x once nb >= 2).
    Bb = _pick_batch_block(B)
    assert B % Bb == 0, f"batch {B} must be divisible by block {Bb}"
    nb = B // Bb

    def const2(b):                          # broadcast (weight / bias) blocks
        return (0, 0)

    grid_spec = pltpu.PrefetchScalarGridSpec(
        num_scalar_prefetch=0,
        grid=(nb,),
        in_specs=[
            pl.BlockSpec((T, Bb, D), lambda b: (0, b, 0)),        # x
            pl.BlockSpec((Bb, HP), lambda b: (b, 0)),             # h0 (padded)
            pl.BlockSpec((D, G), const2),                         # w_ih^T padded
            pl.BlockSpec((HP, G), const2),                        # w_hh^T padded (fused gates)
            pl.BlockSpec((1, G), const2),                         # folded bias
            pl.BlockSpec((1, HP), const2),                        # b_hh_n
            pl.BlockSpec(w_lin_k.shape, const2),                  # linear weight
            pl.BlockSpec((1, O), const2),                         # linear bias
        ],
        out_specs=(
            pl.BlockSpec((Bb, O), lambda b: (b, 0)),              # pred
            pl.BlockSpec((Bb, HP), lambda b: (b, 0)),             # h_T (lane-dense)
        ),
    )

    pred, hT_pad = pl.pallas_call(
        gru_kernel,
        out_shape=(jax.ShapeDtypeStruct((B, O), jnp.float32),
                   jax.ShapeDtypeStruct((B, HP), jnp.float32)),
        grid_spec=grid_spec,
        compiler_params=pltpu.CompilerParams(
            dimension_semantics=("parallel",)),
    )(x_tbd, h0_pad, w_ih_pad, w_hh_pad, b_pre_pad, b_hn_pad, w_lin_k, b_lin_k)

    return pred, hT_pad[:, :H][None]                              # hidden: (1, B, H)


def reference_forward(x, hidden, params):
    """Pure-JAX f32 reference mirroring torch.nn.GRU + Linear."""
    w_ih, w_hh, b_ih, b_hh, w_lin, b_lin = params
    H = w_hh.shape[1]
    x_input = x[:, 0, :, :]                                       # (B, T, D)
    h = hidden[0]                                                 # (B, H)
    T = x_input.shape[1]
    for t in range(T):
        gi = x_input[:, t, :] @ w_ih.T + b_ih
        gh = h @ w_hh.T + b_hh
        r = jax.nn.sigmoid(gi[:, :H] + gh[:, :H])
        z = jax.nn.sigmoid(gi[:, H:2 * H] + gh[:, H:2 * H])
        n = jnp.tanh(gi[:, 2 * H:] + r * gh[:, 2 * H:])
        h = (1.0 - z) * n + z * h
    pred = h @ w_lin.T + b_lin
    return pred, h[None]


def init_params(key, input_size, hidden_size, output_size):
    """Deterministic init, same shapes as torch.nn.GRU / nn.Linear parameters."""
    ks = jax.random.split(key, 6)
    kgru = 1.0 / np.sqrt(hidden_size)
    klin = 1.0 / np.sqrt(hidden_size)
    w_ih = jax.random.uniform(ks[0], (3 * hidden_size, input_size),
                              jnp.float32, -kgru, kgru)
    w_hh = jax.random.uniform(ks[1], (3 * hidden_size, hidden_size),
                              jnp.float32, -kgru, kgru)
    b_ih = jax.random.uniform(ks[2], (3 * hidden_size,), jnp.float32, -kgru, kgru)
    b_hh = jax.random.uniform(ks[3], (3 * hidden_size,), jnp.float32, -kgru, kgru)
    w_lin = jax.random.uniform(ks[4], (output_size, hidden_size),
                               jnp.float32, -klin, klin)
    b_lin = jax.random.uniform(ks[5], (output_size,), jnp.float32, -klin, klin)
    return (w_ih, w_hh, b_ih, b_hh, w_lin, b_lin)


if __name__ == "__main__":
    B, C, T = 8, 4, 8
    input_size, hidden_size, output_size = 16, 32, 1

    key = jax.random.PRNGKey(0)
    k_x, k_h, k_p = jax.random.split(key, 3)

    x = jax.random.normal(k_x, (B, C, T, input_size), jnp.float32)
    hidden = jax.random.normal(k_h, (1, B, hidden_size), jnp.float32)
    params = init_params(k_p, input_size, hidden_size, output_size)

    pred, h_out = simple_gru_forward(x, hidden, params)
    pred, h_out = jax.block_until_ready((pred, h_out))

    # f32 reference; kernel uses bf16 MXU operands (f32 accumulation), so
    # compare with a correspondingly relaxed tolerance.
    pred_ref, h_ref = reference_forward(x, hidden, params)
    assert pred.shape == (B, output_size) and h_out.shape == (1, B, hidden_size)
    assert np.allclose(np.asarray(pred), np.asarray(pred_ref), rtol=5e-2, atol=5e-2)
    assert np.allclose(np.asarray(h_out), np.asarray(h_ref), rtol=5e-2, atol=5e-2)

    print("KERNEL_OK")
</pallas_src>

<mosaic_0001>
module attributes {stable_mosaic.version = 11 : i64} {
  func.func @gru_kernel(%arg0: i32, %arg1: memref<8x8x16xbf16, #tpu.memory_space<vmem>>, %arg2: memref<8x128xf32, #tpu.memory_space<vmem>>, %arg3: memref<16x384xbf16, #tpu.memory_space<vmem>>, %arg4: memref<128x384xbf16, #tpu.memory_space<vmem>>, %arg5: memref<1x384xf32, #tpu.memory_space<vmem>>, %arg6: memref<1x128xf32, #tpu.memory_space<vmem>>, %arg7: memref<1x128xf32, #tpu.memory_space<vmem>>, %arg8: memref<1x1xf32, #tpu.memory_space<vmem>>, %arg9: memref<8x1xf32, #tpu.memory_space<vmem>>, %arg10: memref<8x128xf32, #tpu.memory_space<vmem>>) attributes {dimension_semantics = [#tpu.dimension_semantics<parallel>], iteration_bounds = array<i64: 1>, scalar_prefetch = 0 : i64, scratch_operands = 0 : i64, tpu.core_type = #tpu.core_type<tc>, window_params = [{transform_indices = @transform_0, window_bounds = array<i64: 8, 8, 16>}, {transform_indices = @transform_1, window_bounds = array<i64: 8, 128>}, {pipeline_mode = #tpu.pipeline_mode<synchronous>, transform_indices = @transform_2, window_bounds = array<i64: 16, 384>}, {pipeline_mode = #tpu.pipeline_mode<synchronous>, transform_indices = @transform_3, window_bounds = array<i64: 128, 384>}, {pipeline_mode = #tpu.pipeline_mode<synchronous>, transform_indices = @transform_4, window_bounds = array<i64: 1, 384>}, {pipeline_mode = #tpu.pipeline_mode<synchronous>, transform_indices = @transform_5, window_bounds = array<i64: 1, 128>}, {pipeline_mode = #tpu.pipeline_mode<synchronous>, transform_indices = @transform_6, window_bounds = array<i64: 1, 128>}, {pipeline_mode = #tpu.pipeline_mode<synchronous>, transform_indices = @transform_7, window_bounds = array<i64: 1, 1>}, {transform_indices = @transform_8, window_bounds = array<i64: 8, 1>}, {transform_indices = @transform_9, window_bounds = array<i64: 8, 128>}]} {
    %c0 = arith.constant 0 : index
    %c0_0 = arith.constant 0 : index
    %c0_1 = arith.constant 0 : index
    %0 = vector.load %arg1[%c0, %c0_0, %c0_1] : memref<8x8x16xbf16, #tpu.memory_space<vmem>>, vector<8x8x16xbf16>
    %1 = vector.shape_cast %0 : vector<8x8x16xbf16> to vector<64x16xbf16>
    %c0_2 = arith.constant 0 : index
    %c0_3 = arith.constant 0 : index
    %2 = vector.load %arg3[%c0_2, %c0_3] : memref<16x384xbf16, #tpu.memory_space<vmem>>, vector<16x384xbf16>
    %cst = arith.constant dense<0.000000e+00> : vector<64x384xf32>
    %3 = tpu.matmul %1, %2, %cst {dimension_numbers = #tpu.dot_dimension_numbers<[1], [0], [0], [1], [0, 0, 1, 1], [], []>} : vector<64x16xbf16>, vector<16x384xbf16>, vector<64x384xf32> -> vector<64x384xf32>
    %c0_4 = arith.constant 0 : index
    %c0_5 = arith.constant 0 : index
    %4 = vector.load %arg5[%c0_4, %c0_5] : memref<1x384xf32, #tpu.memory_space<vmem>>, vector<1x384xf32>
    %5 = vector.broadcast %4 : vector<1x384xf32> to vector<64x384xf32>
    %6 = arith.addf %3, %5 : vector<64x384xf32>
    %7 = vector.shape_cast %6 : vector<64x384xf32> to vector<8x8x384xf32>
    %c0_6 = arith.constant 0 : index
    %c0_7 = arith.constant 0 : index
    %8 = vector.load %arg4[%c0_6, %c0_7] : memref<128x384xbf16, #tpu.memory_space<vmem>>, vector<128x384xbf16>
    %c0_8 = arith.constant 0 : index
    %c0_9 = arith.constant 0 : index
    %9 = vector.load %arg6[%c0_8, %c0_9] : memref<1x128xf32, #tpu.memory_space<vmem>>, vector<1x128xf32>
    %c0_10 = arith.constant 0 : index
    %c0_11 = arith.constant 0 : index
    %10 = vector.load %arg2[%c0_10, %c0_11] : memref<8x128xf32, #tpu.memory_space<vmem>>, vector<8x128xf32>
    %11 = arith.truncf %10 : vector<8x128xf32> to vector<8x128xbf16>
    %cst_12 = arith.constant dense<0.000000e+00> : vector<8x384xf32>
    %12 = tpu.matmul %11, %8, %cst_12 {dimension_numbers = #tpu.dot_dimension_numbers<[1], [0], [0], [1], [0, 0, 1, 1], [], []>} : vector<8x128xbf16>, vector<128x384xbf16>, vector<8x384xf32> -> vector<8x384xf32>
    %13 = vector.extract_strided_slice %7 {offsets = [0, 0, 0], sizes = [1, 8, 384], strides = [1, 1, 1]} : vector<8x8x384xf32> to vector<1x8x384xf32>
    %14 = vector.shape_cast %13 : vector<1x8x384xf32> to vector<8x384xf32>
    %15 = vector.extract_strided_slice %14 {offsets = [0, 0], sizes = [8, 256], strides = [1, 1]} : vector<8x384xf32> to vector<8x256xf32>
    %16 = vector.extract_strided_slice %12 {offsets = [0, 0], sizes = [8, 256], strides = [1, 1]} : vector<8x384xf32> to vector<8x256xf32>
    %17 = arith.addf %15, %16 : vector<8x256xf32>
    %cst_13 = arith.constant 5.000000e-01 : f32
    %18 = vector.broadcast %cst_13 : f32 to vector<8x256xf32>
    %19 = arith.mulf %18, %17 : vector<8x256xf32>
    %20 = math.tanh %19 : vector<8x256xf32>
    %cst_14 = arith.constant 1.000000e+00 : f32
    %21 = vector.broadcast %cst_14 : f32 to vector<8x256xf32>
    %22 = arith.addf %20, %21 : vector<8x256xf32>
    %cst_15 = arith.constant 5.000000e-01 : f32
    %23 = vector.broadcast %cst_15 : f32 to vector<8x256xf32>
    %24 = arith.mulf %23, %22 : vector<8x256xf32>
    %25 = vector.extract_strided_slice %24 {offsets = [0, 0], sizes = [8, 128], strides = [1, 1]} : vector<8x256xf32> to vector<8x128xf32>
    %26 = vector.extract_strided_slice %24 {offsets = [0, 128], sizes = [8, 128], strides = [1, 1]} : vector<8x256xf32> to vector<8x128xf32>
    %27 = vector.extract_strided_slice %14 {offsets = [0, 256], sizes = [8, 128], strides = [1, 1]} : vector<8x384xf32> to vector<8x128xf32>
    %28 = vector.extract_strided_slice %12 {offsets = [0, 256], sizes = [8, 128], strides = [1, 1]} : vector<8x384xf32> to vector<8x128xf32>
    %29 = vector.broadcast %9 : vector<1x128xf32> to vector<8x128xf32>
    %30 = arith.addf %28, %29 : vector<8x128xf32>
    %31 = arith.mulf %25, %30 : vector<8x128xf32>
    %32 = arith.addf %27, %31 : vector<8x128xf32>
    %33 = math.tanh %32 : vector<8x128xf32>
    %cst_16 = arith.constant 1.000000e+00 : f32
    %34 = vector.broadcast %cst_16 : f32 to vector<8x128xf32>
    %35 = arith.subf %34, %26 : vector<8x128xf32>
    %36 = arith.mulf %35, %33 : vector<8x128xf32>
    %37 = arith.mulf %26, %10 : vector<8x128xf32>
    %38 = arith.addf %36, %37 : vector<8x128xf32>
    %39 = arith.truncf %38 : vector<8x128xf32> to vector<8x128xbf16>
    %cst_17 = arith.constant dense<0.000000e+00> : vector<8x384xf32>
    %40 = tpu.matmul %39, %8, %cst_17 {dimension_numbers = #tpu.dot_dimension_numbers<[1], [0], [0], [1], [0, 0, 1, 1], [], []>} : vector<8x128xbf16>, vector<128x384xbf16>, vector<8x384xf32> -> vector<8x384xf32>
    %41 = vector.extract_strided_slice %7 {offsets = [1, 0, 0], sizes = [1, 8, 384], strides = [1, 1, 1]} : vector<8x8x384xf32> to vector<1x8x384xf32>
    %42 = vector.shape_cast %41 : vector<1x8x384xf32> to vector<8x384xf32>
    %43 = vector.extract_strided_slice %42 {offsets = [0, 0], sizes = [8, 256], strides = [1, 1]} : vector<8x384xf32> to vector<8x256xf32>
    %44 = vector.extract_strided_slice %40 {offsets = [0, 0], sizes = [8, 256], strides = [1, 1]} : vector<8x384xf32> to vector<8x256xf32>
    %45 = arith.addf %43, %44 : vector<8x256xf32>
    %cst_18 = arith.constant 5.000000e-01 : f32
    %46 = vector.broadcast %cst_18 : f32 to vector<8x256xf32>
    %47 = arith.mulf %46, %45 : vector<8x256xf32>
    %48 = math.tanh %47 : vector<8x256xf32>
    %cst_19 = arith.constant 1.000000e+00 : f32
    %49 = vector.broadcast %cst_19 : f32 to vector<8x256xf32>
    %50 = arith.addf %48, %49 : vector<8x256xf32>
    %cst_20 = arith.constant 5.000000e-01 : f32
    %51 = vector.broadcast %cst_20 : f32 to vector<8x256xf32>
    %52 = arith.mulf %51, %50 : vector<8x256xf32>
    %53 = vector.extract_strided_slice %52 {offsets = [0, 0], sizes = [8, 128], strides = [1, 1]} : vector<8x256xf32> to vector<8x128xf32>
    %54 = vector.extract_strided_slice %52 {offsets = [0, 128], sizes = [8, 128], strides = [1, 1]} : vector<8x256xf32> to vector<8x128xf32>
    %55 = vector.extract_strided_slice %42 {offsets = [0, 256], sizes = [8, 128], strides = [1, 1]} : vector<8x384xf32> to vector<8x128xf32>
    %56 = vector.extract_strided_slice %40 {offsets = [0, 256], sizes = [8, 128], strides = [1, 1]} : vector<8x384xf32> to vector<8x128xf32>
    %57 = vector.broadcast %9 : vector<1x128xf32> to vector<8x128xf32>
    %58 = arith.addf %56, %57 : vector<8x128xf32>
    %59 = arith.mulf %53, %58 : vector<8x128xf32>
    %60 = arith.addf %55, %59 : vector<8x128xf32>
    %61 = math.tanh %60 : vector<8x128xf32>
    %cst_21 = arith.constant 1.000000e+00 : f32
    %62 = vector.broadcast %cst_21 : f32 to vector<8x128xf32>
    %63 = arith.subf %62, %54 : vector<8x128xf32>
    %64 = arith.mulf %63, %61 : vector<8x128xf32>
    %65 = arith.mulf %54, %38 : vector<8x128xf32>
    %66 = arith.addf %64, %65 : vector<8x128xf32>
    %67 = arith.truncf %66 : vector<8x128xf32> to vector<8x128xbf16>
    %cst_22 = arith.constant dense<0.000000e+00> : vector<8x384xf32>
    %68 = tpu.matmul %67, %8, %cst_22 {dimension_numbers = #tpu.dot_dimension_numbers<[1], [0], [0], [1], [0, 0, 1, 1], [], []>} : vector<8x128xbf16>, vector<128x384xbf16>, vector<8x384xf32> -> vector<8x384xf32>
    %69 = vector.extract_strided_slice %7 {offsets = [2, 0, 0], sizes = [1, 8, 384], strides = [1, 1, 1]} : vector<8x8x384xf32> to vector<1x8x384xf32>
    %70 = vector.shape_cast %69 : vector<1x8x384xf32> to vector<8x384xf32>
    %71 = vector.extract_strided_slice %70 {offsets = [0, 0], sizes = [8, 256], strides = [1, 1]} : vector<8x384xf32> to vector<8x256xf32>
    %72 = vector.extract_strided_slice %68 {offsets = [0, 0], sizes = [8, 256], strides = [1, 1]} : vector<8x384xf32> to vector<8x256xf32>
    %73 = arith.addf %71, %72 : vector<8x256xf32>
    %cst_23 = arith.constant 5.000000e-01 : f32
    %74 = vector.broadcast %cst_23 : f32 to vector<8x256xf32>
    %75 = arith.mulf %74, %73 : vector<8x256xf32>
    %76 = math.tanh %75 : vector<8x256xf32>
    %cst_24 = arith.constant 1.000000e+00 : f32
    %77 = vector.broadcast %cst_24 : f32 to vector<8x256xf32>
    %78 = arith.addf %76, %77 : vector<8x256xf32>
    %cst_25 = arith.constant 5.000000e-01 : f32
    %79 = vector.broadcast %cst_25 : f32 to vector<8x256xf32>
    %80 = arith.mulf %79, %78 : vector<8x256xf32>
    %81 = vector.extract_strided_slice %80 {offsets = [0, 0], sizes = [8, 128], strides = [1, 1]} : vector<8x256xf32> to vector<8x128xf32>
    %82 = vector.extract_strided_slice %80 {offsets = [0, 128], sizes = [8, 128], strides = [1, 1]} : vector<8x256xf32> to vector<8x128xf32>
    %83 = vector.extract_strided_slice %70 {offsets = [0, 256], sizes = [8, 128], strides = [1, 1]} : vector<8x384xf32> to vector<8x128xf32>
    %84 = vector.extract_strided_slice %68 {offsets = [0, 256], sizes = [8, 128], strides = [1, 1]} : vector<8x384xf32> to vector<8x128xf32>
    %85 = vector.broadcast %9 : vector<1x128xf32> to vector<8x128xf32>
    %86 = arith.addf %84, %85 : vector<8x128xf32>
    %87 = arith.mulf %81, %86 : vector<8x128xf32>
    %88 = arith.addf %83, %87 : vector<8x128xf32>
    %89 = math.tanh %88 : vector<8x128xf32>
    %cst_26 = arith.constant 1.000000e+00 : f32
    %90 = vector.broadcast %cst_26 : f32 to vector<8x128xf32>
    %91 = arith.subf %90, %82 : vector<8x128xf32>
    %92 = arith.mulf %91, %89 : vector<8x128xf32>
    %93 = arith.mulf %82, %66 : vector<8x128xf32>
    %94 = arith.addf %92, %93 : vector<8x128xf32>
    %95 = arith.truncf %94 : vector<8x128xf32> to vector<8x128xbf16>
    %cst_27 = arith.constant dense<0.000000e+00> : vector<8x384xf32>
    %96 = tpu.matmul %95, %8, %cst_27 {dimension_numbers = #tpu.dot_dimension_numbers<[1], [0], [0], [1], [0, 0, 1, 1], [], []>} : vector<8x128xbf16>, vector<128x384xbf16>, vector<8x384xf32> -> vector<8x384xf32>
    %97 = vector.extract_strided_slice %7 {offsets = [3, 0, 0], sizes = [1, 8, 384], strides = [1, 1, 1]} : vector<8x8x384xf32> to vector<1x8x384xf32>
    %98 = vector.shape_cast %97 : vector<1x8x384xf32> to vector<8x384xf32>
    %99 = vector.extract_strided_slice %98 {offsets = [0, 0], sizes = [8, 256], strides = [1, 1]} : vector<8x384xf32> to vector<8x256xf32>
    %100 = vector.extract_strided_slice %96 {offsets = [0, 0], sizes = [8, 256], strides = [1, 1]} : vector<8x384xf32> to vector<8x256xf32>
    %101 = arith.addf %99, %100 : vector<8x256xf32>
    %cst_28 = arith.constant 5.000000e-01 : f32
    %102 = vector.broadcast %cst_28 : f32 to vector<8x256xf32>
    %103 = arith.mulf %102, %101 : vector<8x256xf32>
    %104 = math.tanh %103 : vector<8x256xf32>
    %cst_29 = arith.constant 1.000000e+00 : f32
    %105 = vector.broadcast %cst_29 : f32 to vector<8x256xf32>
    %106 = arith.addf %104, %105 : vector<8x256xf32>
    %cst_30 = arith.constant 5.000000e-01 : f32
    %107 = vector.broadcast %cst_30 : f32 to vector<8x256xf32>
    %108 = arith.mulf %107, %106 : vector<8x256xf32>
    %109 = vector.extract_strided_slice %108 {offsets = [0, 0], sizes = [8, 128], strides = [1, 1]} : vector<8x256xf32> to vector<8x128xf32>
    %110 = vector.extract_strided_slice %108 {offsets = [0, 128], sizes = [8, 128], strides = [1, 1]} : vector<8x256xf32> to vector<8x128xf32>
    %111 = vector.extract_strided_slice %98 {offsets = [0, 256], sizes = [8, 128], strides = [1, 1]} : vector<8x384xf32> to vector<8x128xf32>
    %112 = vector.extract_strided_slice %96 {offsets = [0, 256], sizes = [8, 128], strides = [1, 1]} : vector<8x384xf32> to vector<8x128xf32>
    %113 = vector.broadcast %9 : vector<1x128xf32> to vector<8x128xf32>
    %114 = arith.addf %112, %113 : vector<8x128xf32>
    %115 = arith.mulf %109, %114 : vector<8x128xf32>
    %116 = arith.addf %111, %115 : vector<8x128xf32>
    %117 = math.tanh %116 : vector<8x128xf32>
    %cst_31 = arith.constant 1.000000e+00 : f32
    %118 = vector.broadcast %cst_31 : f32 to vector<8x128xf32>
    %119 = arith.subf %118, %110 : vector<8x128xf32>
    %120 = arith.mulf %119, %117 : vector<8x128xf32>
    %121 = arith.mulf %110, %94 : vector<8x128xf32>
    %122 = arith.addf %120, %121 : vector<8x128xf32>
    %123 = arith.truncf %122 : vector<8x128xf32> to vector<8x128xbf16>
    %cst_32 = arith.constant dense<0.000000e+00> : vector<8x384xf32>
    %124 = tpu.matmul %123, %8, %cst_32 {dimension_numbers = #tpu.dot_dimension_numbers<[1], [0], [0], [1], [0, 0, 1, 1], [], []>} : vector<8x128xbf16>, vector<128x384xbf16>, vector<8x384xf32> -> vector<8x384xf32>
    %125 = vector.extract_strided_slice %7 {offsets = [4, 0, 0], sizes = [1, 8, 384], strides = [1, 1, 1]} : vector<8x8x384xf32> to vector<1x8x384xf32>
    %126 = vector.shape_cast %125 : vector<1x8x384xf32> to vector<8x384xf32>
    %127 = vector.extract_strided_slice %126 {offsets = [0, 0], sizes = [8, 256], strides = [1, 1]} : vector<8x384xf32> to vector<8x256xf32>
    %128 = vector.extract_strided_slice %124 {offsets = [0, 0], sizes = [8, 256], strides = [1, 1]} : vector<8x384xf32> to vector<8x256xf32>
    %129 = arith.addf %127, %128 : vector<8x256xf32>
    %cst_33 = arith.constant 5.000000e-01 : f32
    %130 = vector.broadcast %cst_33 : f32 to vector<8x256xf32>
    %131 = arith.mulf %130, %129 : vector<8x256xf32>
    %132 = math.tanh %131 : vector<8x256xf32>
    %cst_34 = arith.constant 1.000000e+00 : f32
    %133 = vector.broadcast %cst_34 : f32 to vector<8x256xf32>
    %134 = arith.addf %132, %133 : vector<8x256xf32>
    %cst_35 = arith.constant 5.000000e-01 : f32
    %135 = vector.broadcast %cst_35 : f32 to vector<8x256xf32>
    %136 = arith.mulf %135, %134 : vector<8x256xf32>
    %137 = vector.extract_strided_slice %136 {offsets = [0, 0], sizes = [8, 128], strides = [1, 1]} : vector<8x256xf32> to vector<8x128xf32>
    %138 = vector.extract_strided_slice %136 {offsets = [0, 128], sizes = [8, 128], strides = [1, 1]} : vector<8x256xf32> to vector<8x128xf32>
    %139 = vector.extract_strided_slice %126 {offsets = [0, 256], sizes = [8, 128], strides = [1, 1]} : vector<8x384xf32> to vector<8x128xf32>
    %140 = vector.extract_strided_slice %124 {offsets = [0, 256], sizes = [8, 128], strides = [1, 1]} : vector<8x384xf32> to vector<8x128xf32>
    %141 = vector.broadcast %9 : vector<1x128xf32> to vector<8x128xf32>
    %142 = arith.addf %140, %141 : vector<8x128xf32>
    %143 = arith.mulf %137, %142 : vector<8x128xf32>
    %144 = arith.addf %139, %143 : vector<8x128xf32>
    %145 = math.tanh %144 : vector<8x128xf32>
    %cst_36 = arith.constant 1.000000e+00 : f32
    %146 = vector.broadcast %cst_36 : f32 to vector<8x128xf32>
    %147 = arith.subf %146, %138 : vector<8x128xf32>
    %148 = arith.mulf %147, %145 : vector<8x128xf32>
    %149 = arith.mulf %138, %122 : vector<8x128xf32>
    %150 = arith.addf %148, %149 : vector<8x128xf32>
    %151 = arith.truncf %150 : vector<8x128xf32> to vector<8x128xbf16>
    %cst_37 = arith.constant dense<0.000000e+00> : vector<8x384xf32>
    %152 = tpu.matmul %151, %8, %cst_37 {dimension_numbers = #tpu.dot_dimension_numbers<[1], [0], [0], [1], [0, 0, 1, 1], [], []>} : vector<8x128xbf16>, vector<128x384xbf16>, vector<8x384xf32> -> vector<8x384xf32>
    %153 = vector.extract_strided_slice %7 {offsets = [5, 0, 0], sizes = [1, 8, 384], strides = [1, 1, 1]} : vector<8x8x384xf32> to vector<1x8x384xf32>
    %154 = vector.shape_cast %153 : vector<1x8x384xf32> to vector<8x384xf32>
    %155 = vector.extract_strided_slice %154 {offsets = [0, 0], sizes = [8, 256], strides = [1, 1]} : vector<8x384xf32> to vector<8x256xf32>
    %156 = vector.extract_strided_slice %152 {offsets = [0, 0], sizes = [8, 256], strides = [1, 1]} : vector<8x384xf32> to vector<8x256xf32>
    %157 = arith.addf %155, %156 : vector<8x256xf32>
    %cst_38 = arith.constant 5.000000e-01 : f32
    %158 = vector.broadcast %cst_38 : f32 to vector<8x256xf32>
    %159 = arith.mulf %158, %157 : vector<8x256xf32>
    %160 = math.tanh %159 : vector<8x256xf32>
    %cst_39 = arith.constant 1.000000e+00 : f32
    %161 = vector.broadcast %cst_39 : f32 to vector<8x256xf32>
    %162 = arith.addf %160, %161 : vector<8x256xf32>
    %cst_40 = arith.constant 5.000000e-01 : f32
    %163 = vector.broadcast %cst_40 : f32 to vector<8x256xf32>
    %164 = arith.mulf %163, %162 : vector<8x256xf32>
    %165 = vector.extract_strided_slice %164 {offsets = [0, 0], sizes = [8, 128], strides = [1, 1]} : vector<8x256xf32> to vector<8x128xf32>
    %166 = vector.extract_strided_slice %164 {offsets = [0, 128], sizes = [8, 128], strides = [1, 1]} : vector<8x256xf32> to vector<8x128xf32>
    %167 = vector.extract_strided_slice %154 {offsets = [0, 256], sizes = [8, 128], strides = [1, 1]} : vector<8x384xf32> to vector<8x128xf32>
    %168 = vector.extract_strided_slice %152 {offsets = [0, 256], sizes = [8, 128], strides = [1, 1]} : vector<8x384xf32> to vector<8x128xf32>
    %169 = vector.broadcast %9 : vector<1x128xf32> to vector<8x128xf32>
    %170 = arith.addf %168, %169 : vector<8x128xf32>
    %171 = arith.mulf %165, %170 : vector<8x128xf32>
    %172 = arith.addf %167, %171 : vector<8x128xf32>
    %173 = math.tanh %172 : vector<8x128xf32>
    %cst_41 = arith.constant 1.000000e+00 : f32
    %174 = vector.broadcast %cst_41 : f32 to vector<8x128xf32>
    %175 = arith.subf %174, %166 : vector<8x128xf32>
    %176 = arith.mulf %175, %173 : vector<8x128xf32>
    %177 = arith.mulf %166, %150 : vector<8x128xf32>
    %178 = arith.addf %176, %177 : vector<8x128xf32>
    %179 = arith.truncf %178 : vector<8x128xf32> to vector<8x128xbf16>
    %cst_42 = arith.constant dense<0.000000e+00> : vector<8x384xf32>
    %180 = tpu.matmul %179, %8, %cst_42 {dimension_numbers = #tpu.dot_dimension_numbers<[1], [0], [0], [1], [0, 0, 1, 1], [], []>} : vector<8x128xbf16>, vector<128x384xbf16>, vector<8x384xf32> -> vector<8x384xf32>
    %181 = vector.extract_strided_slice %7 {offsets = [6, 0, 0], sizes = [1, 8, 384], strides = [1, 1, 1]} : vector<8x8x384xf32> to vector<1x8x384xf32>
    %182 = vector.shape_cast %181 : vector<1x8x384xf32> to vector<8x384xf32>
    %183 = vector.extract_strided_slice %182 {offsets = [0, 0], sizes = [8, 256], strides = [1, 1]} : vector<8x384xf32> to vector<8x256xf32>
    %184 = vector.extract_strided_slice %180 {offsets = [0, 0], sizes = [8, 256], strides = [1, 1]} : vector<8x384xf32> to vector<8x256xf32>
    %185 = arith.addf %183, %184 : vector<8x256xf32>
    %cst_43 = arith.constant 5.000000e-01 : f32
    %186 = vector.broadcast %cst_43 : f32 to vector<8x256xf32>
    %187 = arith.mulf %186, %185 : vector<8x256xf32>
    %188 = math.tanh %187 : vector<8x256xf32>
    %cst_44 = arith.constant 1.000000e+00 : f32
    %189 = vector.broadcast %cst_44 : f32 to vector<8x256xf32>
    %190 = arith.addf %188, %189 : vector<8x256xf32>
    %cst_45 = arith.constant 5.000000e-01 : f32
    %191 = vector.broadcast %cst_45 : f32 to vector<8x256xf32>
    %192 = arith.mulf %191, %190 : vector<8x256xf32>
    %193 = vector.extract_strided_slice %192 {offsets = [0, 0], sizes = [8, 128], strides = [1, 1]} : vector<8x256xf32> to vector<8x128xf32>
    %194 = vector.extract_strided_slice %192 {offsets = [0, 128], sizes = [8, 128], strides = [1, 1]} : vector<8x256xf32> to vector<8x128xf32>
    %195 = vector.extract_strided_slice %182 {offsets = [0, 256], sizes = [8, 128], strides = [1, 1]} : vector<8x384xf32> to vector<8x128xf32>
    %196 = vector.extract_strided_slice %180 {offsets = [0, 256], sizes = [8, 128], strides = [1, 1]} : vector<8x384xf32> to vector<8x128xf32>
    %197 = vector.broadcast %9 : vector<1x128xf32> to vector<8x128xf32>
    %198 = arith.addf %196, %197 : vector<8x128xf32>
    %199 = arith.mulf %193, %198 : vector<8x128xf32>
    %200 = arith.addf %195, %199 : vector<8x128xf32>
    %201 = math.tanh %200 : vector<8x128xf32>
    %cst_46 = arith.constant 1.000000e+00 : f32
    %202 = vector.broadcast %cst_46 : f32 to vector<8x128xf32>
    %203 = arith.subf %202, %194 : vector<8x128xf32>
    %204 = arith.mulf %203, %201 : vector<8x128xf32>
    %205 = arith.mulf %194, %178 : vector<8x128xf32>
    %206 = arith.addf %204, %205 : vector<8x128xf32>
    %207 = arith.truncf %206 : vector<8x128xf32> to vector<8x128xbf16>
    %cst_47 = arith.constant dense<0.000000e+00> : vector<8x384xf32>
    %208 = tpu.matmul %207, %8, %cst_47 {dimension_numbers = #tpu.dot_dimension_numbers<[1], [0], [0], [1], [0, 0, 1, 1], [], []>} : vector<8x128xbf16>, vector<128x384xbf16>, vector<8x384xf32> -> vector<8x384xf32>
    %209 = vector.extract_strided_slice %7 {offsets = [7, 0, 0], sizes = [1, 8, 384], strides = [1, 1, 1]} : vector<8x8x384xf32> to vector<1x8x384xf32>
    %210 = vector.shape_cast %209 : vector<1x8x384xf32> to vector<8x384xf32>
    %211 = vector.extract_strided_slice %210 {offsets = [0, 0], sizes = [8, 256], strides = [1, 1]} : vector<8x384xf32> to vector<8x256xf32>
    %212 = vector.extract_strided_slice %208 {offsets = [0, 0], sizes = [8, 256], strides = [1, 1]} : vector<8x384xf32> to vector<8x256xf32>
    %213 = arith.addf %211, %212 : vector<8x256xf32>
    %cst_48 = arith.constant 5.000000e-01 : f32
    %214 = vector.broadcast %cst_48 : f32 to vector<8x256xf32>
    %215 = arith.mulf %214, %213 : vector<8x256xf32>
    %216 = math.tanh %215 : vector<8x256xf32>
    %cst_49 = arith.constant 1.000000e+00 : f32
    %217 = vector.broadcast %cst_49 : f32 to vector<8x256xf32>
    %218 = arith.addf %216, %217 : vector<8x256xf32>
    %cst_50 = arith.constant 5.000000e-01 : f32
    %219 = vector.broadcast %cst_50 : f32 to vector<8x256xf32>
    %220 = arith.mulf %219, %218 : vector<8x256xf32>
    %221 = vector.extract_strided_slice %220 {offsets = [0, 0], sizes = [8, 128], strides = [1, 1]} : vector<8x256xf32> to vector<8x128xf32>
    %222 = vector.extract_strided_slice %220 {offsets = [0, 128], sizes = [8, 128], strides = [1, 1]} : vector<8x256xf32> to vector<8x128xf32>
    %223 = vector.extract_strided_slice %210 {offsets = [0, 256], sizes = [8, 128], strides = [1, 1]} : vector<8x384xf32> to vector<8x128xf32>
    %224 = vector.extract_strided_slice %208 {offsets = [0, 256], sizes = [8, 128], strides = [1, 1]} : vector<8x384xf32> to vector<8x128xf32>
    %225 = vector.broadcast %9 : vector<1x128xf32> to vector<8x128xf32>
    %226 = arith.addf %224, %225 : vector<8x128xf32>
    %227 = arith.mulf %221, %226 : vector<8x128xf32>
    %228 = arith.addf %223, %227 : vector<8x128xf32>
    %229 = math.tanh %228 : vector<8x128xf32>
    %cst_51 = arith.constant 1.000000e+00 : f32
    %230 = vector.broadcast %cst_51 : f32 to vector<8x128xf32>
    %231 = arith.subf %230, %222 : vector<8x128xf32>
    %232 = arith.mulf %231, %229 : vector<8x128xf32>
    %233 = arith.mulf %222, %206 : vector<8x128xf32>
    %234 = arith.addf %232, %233 : vector<8x128xf32>
    %c0_52 = arith.constant 0 : index
    %c0_53 = arith.constant 0 : index
    %235 = vector.load %arg10[%c0_52, %c0_53] : memref<8x128xf32, #tpu.memory_space<vmem>>, vector<8x128xf32>
    tpu.vector_store %arg10[%c0_52, %c0_53], %234 {strides = array<i32>} : memref<8x128xf32, #tpu.memory_space<vmem>>, vector<8x128xf32>,
    %c0_54 = arith.constant 0 : index
    %c0_55 = arith.constant 0 : index
    %236 = vector.load %arg7[%c0_54, %c0_55] : memref<1x128xf32, #tpu.memory_space<vmem>>, vector<1x128xf32>
    %237 = vector.broadcast %236 : vector<1x128xf32> to vector<8x128xf32>
    %238 = arith.mulf %234, %237 : vector<8x128xf32>
    %cst_56 = arith.constant dense<0.000000e+00> : vector<8xf32>
    %239 = vector.multi_reduction <add>, %238, %cst_56 [1] : vector<8x128xf32> to vector<8xf32>
    %240 = vector.shape_cast %239 : vector<8xf32> to vector<8x1xf32>
    %c0_57 = arith.constant 0 : index
    %c0_58 = arith.constant 0 : index
    %241 = vector.load %arg8[%c0_57, %c0_58] : memref<1x1xf32, #tpu.memory_space<vmem>>, vector<1x1xf32>
    %242 = vector.broadcast %241 : vector<1x1xf32> to vector<8x1xf32>
    %243 = arith.addf %240, %242 : vector<8x1xf32>
    %c0_59 = arith.constant 0 : index
    %c0_60 = arith.constant 0 : index
    %244 = vector.load %arg9[%c0_59, %c0_60] : memref<8x1xf32, #tpu.memory_space<vmem>>, vector<8x1xf32>
    tpu.vector_store %arg9[%c0_59, %c0_60], %243 {strides = array<i32>} : memref<8x1xf32, #tpu.memory_space<vmem>>, vector<8x1xf32>,
    return
  }
  func.func @transform_0(%arg0: i32) -> (i32, i32, i32) {
    %c0_i32 = arith.constant 0 : i32
    %c0_i32_0 = arith.constant 0 : i32
    %c0_i32_1 = arith.constant 0 : i32
    return %c0_i32, %arg0, %c0_i32_0 : i32, i32, i32
  }
  func.func @transform_1(%arg0: i32) -> (i32, i32) {
    %c0_i32 = arith.constant 0 : i32
    %c0_i32_0 = arith.constant 0 : i32
    return %arg0, %c0_i32 : i32, i32
  }
  func.func @transform_2(%arg0: i32) -> (i32, i32) {
    %c0_i32 = arith.constant 0 : i32
    %c0_i32_0 = arith.constant 0 : i32
    %c0_i32_1 = arith.constant 0 : i32
    return %c0_i32, %c0_i32_0 : i32, i32
  }
  func.func @transform_3(%arg0: i32) -> (i32, i32) {
    %c0_i32 = arith.constant 0 : i32
    %c0_i32_0 = arith.constant 0 : i32
    %c0_i32_1 = arith.constant 0 : i32
    return %c0_i32, %c0_i32_0 : i32, i32
  }
  func.func @transform_4(%arg0: i32) -> (i32, i32) {
    %c0_i32 = arith.constant 0 : i32
    %c0_i32_0 = arith.constant 0 : i32
    %c0_i32_1 = arith.constant 0 : i32
    return %c0_i32, %c0_i32_0 : i32, i32
  }
  func.func @transform_5(%arg0: i32) -> (i32, i32) {
    %c0_i32 = arith.constant 0 : i32
    %c0_i32_0 = arith.constant 0 : i32
    %c0_i32_1 = arith.constant 0 : i32
    return %c0_i32, %c0_i32_0 : i32, i32
  }
  func.func @transform_6(%arg0: i32) -> (i32, i32) {
    %c0_i32 = arith.constant 0 : i32
    %c0_i32_0 = arith.constant 0 : i32
    %c0_i32_1 = arith.constant 0 : i32
    return %c0_i32, %c0_i32_0 : i32, i32
  }
  func.func @transform_7(%arg0: i32) -> (i32, i32) {
    %c0_i32 = arith.constant 0 : i32
    %c0_i32_0 = arith.constant 0 : i32
    %c0_i32_1 = arith.constant 0 : i32
    return %c0_i32, %c0_i32_0 : i32, i32
  }
  func.func @transform_8(%arg0: i32) -> (i32, i32) {
    %c0_i32 = arith.constant 0 : i32
    %c0_i32_0 = arith.constant 0 : i32
    return %arg0, %c0_i32 : i32, i32
  }
  func.func @transform_9(%arg0: i32) -> (i32, i32) {
    %c0_i32 = arith.constant 0 : i32
    %c0_i32_0 = arith.constant 0 : i32
    return %arg0, %c0_i32 : i32, i32
  }
}

</mosaic_0001>

<bundles_post_ra>
// kernel: tpu_custom_call.1
= control target key start
LH: loop header
LB: loop body
LE: loop exit
PB: predicated region body
PF: predicated region fallthrough
CT: control target
= control target key end

     0   :  { %s2361_s0 = inlined_call_operand.hbm [shape: bf16[8,8,16], index: 0, kind: input, shape index: {}]   ;;  %s2362_s1 = inlined_call_operand.hbm [shape: f32[8,128], index: 1, kind: input, shape index: {}]   ;;  %s2363_s2 = inlined_call_operand.hbm [shape: bf16[16,384], index: 2, kind: input, shape index: {}]   ;;  %s2364_s3 = inlined_call_operand.hbm [shape: bf16[128,384], index: 3, kind: input, shape index: {}]   ;;  %s2365_s4 = inlined_call_operand.vmem [shape: f32[1,384], index: 4, kind: input, shape index: {}]   ;;  %s2366_s5 = inlined_call_operand.vmem [shape: f32[1,128], index: 5, kind: input, shape index: {}]   ;;  %s2367_s6 = inlined_call_operand.vmem [shape: f32[1,128], index: 6, kind: input, shape index: {}]   ;;  %s2368_s7 = inlined_call_operand.<no memory space> [shape: f32[1,1], index: 7, kind: input, shape index: {}]   ;;  %s2369_s8 = inlined_call_operand.vmem [shape: f32[8,1], index: 8, kind: output, shape index: {0}]   ;;  %s2370_s9 = inlined_call_operand.hbm [shape: f32[8,128], index: 9, kind: output, shape index: {1}]  }
   0x1   :  { %v15_v0 = vstv %s2368_s7 }
   0x2   :  { %16 = vst [vmem:[#allocation2] sm:$0x1] %v15_v0 }
   0x3   :  { %17 = vsyncpa [#allocation4], 0 }
   0x4   :  { %18 = vsyncpa [#allocation7], 0 }
   0x5   :  { %19 = vsyncpa [#allocation10], 0 }
   0x6   :  { %20 = vsyncpa [#allocation5], 0  ;;  %s1827_s11 = smov [#allocation6]   ;;  %s1828_s13 = smov [#allocation3]  }
   0x7   :  { %s39_s12 = sshll.u32 %s1827_s11, 4  ;;  %s26_s14 = sshll.u32 %s1828_s13, 4  ;;  %s40_s12 = int_to_ptr.vmem [resolvable:$true] %s39_s12  ;;  %s27_s14 = int_to_ptr.vmem [resolvable:$true] %s26_s14 }
   0x8   :  { %s1727_s15 = scalar_lea.vmem %s40_s12, 128  ;;  %p1732_p1 = scmp.lt.s32.totalorder %s40_s12, %s40_s12 }
   0x9   :  { %p1728_p0 = scmp.ne.s32.totalorder %s40_s12, %s1727_s15  ;;  %p1733_p2 = scmp.lt.s32.totalorder %s1727_s15, %s1727_s15 }
   0xb   :  { %p1734_p3 = por %p1733_p2, %p1732_p1 }
   0xd   :  { %p1735_p4 = pnand %p1734_p3, %p1728_p0 }
   0xf   :  { %1738 = shalt.err (!%p1735_p4)
}
  0x10   :  { %42 = dma.hbm_to_vmem [thread:$0]  %s2362_s1, 128, %s40_s12, [#allocation7]  }
  0x11   :  { %s1747_s17 = scalar_lea.vmem %s27_s14, 512  ;;  %p1752_p6 = scmp.lt.s32.totalorder %s27_s14, %s27_s14 }
  0x12   :  { %p1748_p5 = scmp.ne.s32.totalorder %s27_s14, %s1747_s17  ;;  %p1753_p7 = scmp.lt.s32.totalorder %s1747_s17, %s1747_s17 }
  0x14   :  { %p1754_p8 = por %p1753_p7, %p1752_p6 }
  0x16   :  { %p1755_p9 = pnand %p1754_p8, %p1748_p5 }
  0x18   :  { %1758 = shalt.err (!%p1755_p9)
}
  0x19   :  { %s1829_s18 = smov 64   ;;  %s1830_s19 = smov 4  }
  0x1a   :  { %32 = dma.hbm_to_vmem [thread:$0]  %s2361_s0, 512, %s27_s14, [#allocation4], %s1829_s18, %s1829_s18, %s1830_s19  }
  0x1b   :  { %s1831_s22 = smov [#allocation8]  }
  0x1c   :  { %s48_s23 = sshll.u32 %s1831_s22, 4  ;;  %s49_s23 = int_to_ptr.vmem [resolvable:$true] %s48_s23 }
  0x1d   :  { %s1767_s24 = scalar_lea.vmem %s49_s23, 384  ;;  %p1772_p11 = scmp.lt.s32.totalorder %s49_s23, %s49_s23 }
  0x1e   :  { %p1768_p10 = scmp.ne.s32.totalorder %s49_s23, %s1767_s24  ;;  %p1773_p12 = scmp.lt.s32.totalorder %s1767_s24, %s1767_s24 }
  0x20   :  { %p1774_p13 = por %p1773_p12, %p1772_p11 }
  0x22   :  { %p1775_p0 = pnand %p1774_p13, %p1768_p10 }
  0x24   :  { %1778 = shalt.err (!%p1775_p0)
}
  0x25   :  { %s1832_s1 = smov 192   ;;  %s1833_s25 = smov 12  }
  0x26   :  { %54 = dma.hbm_to_vmem [thread:$0]  %s2363_s2, 384, %s49_s23, [#allocation7], %s1832_s1, %s1832_s1, %s1833_s25  }
  0x27   :  { %s1834_s28 = smov [#allocation9]  }
  0x28   :  { %s60_s29 = sshll.u32 %s1834_s28, 4  ;;  %s61_s29 = int_to_ptr.vmem [resolvable:$true] %s60_s29 }
  0x29   :  { %s1787_s0 = scalar_lea.vmem %s61_s29, 3072  ;;  %p1792_p2 = scmp.lt.s32.totalorder %s61_s29, %s61_s29 }
  0x2a   :  { %p1788_p1 = scmp.ne.s32.totalorder %s61_s29, %s1787_s0  ;;  %p1793_p3 = scmp.lt.s32.totalorder %s1787_s0, %s1787_s0 }
  0x2c   :  { %p1794_p4 = por %p1793_p3, %p1792_p2 }
  0x2e   :  { %p1795_p5 = pnand %p1794_p4, %p1788_p1 }
  0x30   :  { %1798 = shalt.err (!%p1795_p5)
}
  0x31   :  { %66 = dma.hbm_to_vmem [thread:$0]  %s2364_s3, 3072, %s61_s29, [#allocation10], %s1832_s1, %s1832_s1, %s1833_s25  }
  0x32   :  { %1819 = dma.done.wait [#allocation4], 512  }
  0x33   :  { %1820 = vsyncadd [#allocation4], 4294966784 }
  0x34   :  { %1821 = dma.done.wait [#allocation7], 512  }
  0x35   :  { %1822 = vsyncadd [#allocation7], 4294966784 }
  0x36   :  { %1823 = dma.done.wait [#allocation10], 3072  }
  0x37   :  { %1824 = vsyncadd [#allocation10], 4294964224  ;;  %v2371_v1 = vmov 0   ;;  %v1615_v2 = vld [vmem:[#allocation8 + $0x4] ss:$12 sps:$4 sm:$0xff]   ;;  %v1618_v4 = vld [vmem:[#allocation3] sm:$0xff]   ;;  %v102_v36 = vlaneseq }
  0x38   :  { %198 = vmatprep.mubr.bf16.mxu0 %v2371_v1  ;;  %v1617_v3 = vld [vmem:[#allocation8] ss:$12 sps:$4 sm:$0xff]   ;;  %180 = vmatprep.subr.bf16.mxu0 %v1615_v2  ;;  %vm153_vm0 = vcmask 130048   ;;  %v1905_v5 = vld [vmem:[#allocation9 + $0xac] ss:$12 sps:$4 sm:$0xff]   ;;  %v2373_v14 = vmov 0.0  }
  0x39   :  { %181 = vmatpush1.bf16.msra.mxu0 %v1617_v3  ;;  %v1907_v6 = vld [vmem:[#allocation9 + $0xa8] ss:$12 sps:$4 sm:$0xff]   ;;  %1435 = vmatprep.mubr.msk.bf16.mxu1 %vm153_vm0, %v1618_v4  ;;  %v1914_v8 = vld [vmem:[#allocation9 + $0x90] ss:$12 sps:$4 sm:$0xff]   ;;  %v1922_v12 = vld [vmem:[#allocation9 + $0x78] ss:$12 sps:$4 sm:$0xff]  }
  0x3a   :  { %v1909_v7 = vld [vmem:[#allocation9 + $0x94] ss:$12 sps:$4 sm:$0xff]   ;;  %467 = vmatprep.subr.bf16.mxu0 %v1905_v5  ;;  %v1918_v9 = vld [vmem:[#allocation9 + $0x7c] ss:$12 sps:$4 sm:$0xff]   ;;  %v1925_v13 = vld [vmem:[#allocation9 + $0x64] ss:$12 sps:$4 sm:$0xff]  }
  0x3b   :  { %v1629_v10 = vld [vmem:[#allocation8 + $0x8] ss:$12 sps:$4 sm:$0xff]   ;;  %v1625_v11 = vld [vmem:[#allocation3 + $0x8] sm:$0xff]   ;;  %v1940_v19 = vld [vmem:[#allocation9 + $0x98] ss:$12 sps:$4 sm:$0xff]   ;;  %vm1837_vm1 = vmmov 0  }
  0x3c   :  { %1321 = vmatmul.mubr.msk.bf16.vlgmr.msra.gmra.mxu0 %vm153_vm0, %v1618_v4  ;;  %1433 = vmatprep.subr.bf16.mxu1 %v1629_v10  ;;  %v1928_v15 = vld [vmem:[#allocation9 + $0xb0] ss:$12 sps:$4 sm:$0xff]   ;;  %v1930_v16 = vld [vmem:[#allocation9 + $0x60] ss:$12 sps:$4 sm:$0xff]   ;;  %v1944_v20 = vld [vmem:[#allocation9 + $0x48] ss:$12 sps:$4 sm:$0xff]  }
  0x3d   :  { %468 = vmatpush1.bf16.msra.mxu0 %v1907_v6  ;;  %208 = vmatprep.mubr.bf16.mxu0 %v2371_v1  ;;  %v1633_v17 = vld [vmem:[#allocation3 + $0x10] sm:$0xff]   ;;  %v1936_v18 = vld [vmem:[#allocation9 + $0x4c] ss:$12 sps:$4 sm:$0xff]   ;;  %v1960_v25 = vld [vmem:[#allocation9 + $0x1c] ss:$12 sps:$4 sm:$0xff]   ;;  %v103_v37 = vshrl.u32 %v102_v36, 7 }
  0x3e   :  { %469 = vmatprep.subr.bf16.mxu0 %v1909_v7  ;;  %1434 = vmatpush3.bf16.msra.mxu1 %v1629_v10  ;;  %v1947_v21 = vld [vmem:[#allocation9 + $0x34] ss:$12 sps:$4 sm:$0xff]   ;;  %v1642_v22 = vld [vmem:[#allocation3 + $0x18] sm:$0xff]   ;;  %v1973_v28 = vld [vmem:[#allocation9 + $0x4] ss:$12 sps:$4 sm:$0xff]   ;;  %s1838_s13 = smov [#allocation11]  }
  0x3f   :  { %1443 = vmatprep.subr.bf16.mxu1 %v2373_v14  ;;  %v1951_v23 = vld [vmem:[#allocation9 + $0x80] ss:$12 sps:$4 sm:$0xff]   ;;  %v1955_v24 = vld [vmem:[#allocation9 + $0x30] ss:$12 sps:$4 sm:$0xff]   ;;  %v1964_v26 = vld [vmem:[#allocation9 + $0x68] ss:$12 sps:$4 sm:$0xff]  }
  0x40   :  { %v1970_v27 = vld [vmem:[#allocation9 + $0x18] ss:$12 sps:$4 sm:$0xff]   ;;  %v1976_v29 = vld [vmem:[#allocation9 + $0x50] ss:$12 sps:$4 sm:$0xff]   ;;  %v1981_v30 = vld [vmem:[#allocation9] ss:$12 sps:$4 sm:$0xff]  }
  0x41   :  { %470 = vmatpush1.bf16.msra.mxu0 %v1914_v8  ;;  %1436 = vmatmul.mubr.msk.bf16.vlgmr.msra.gmra.mxu1 %vm153_vm0, %v1625_v11  ;;  %v1984_v31 = vld [vmem:[#allocation6] sm:$0xff]  ;;  %v2002_v35 = vld [vmem:[#allocation9 + $0x8] ss:$12 sps:$4 sm:$0xff]   ;;  %v104_v38 = vsub.s32 0, %v103_v37  ;;  %v108_v41 = vsub.s32 1, %v103_v37  ;;  %v112_v42 = vsub.s32 2, %v103_v37 }
  0x42   :  { %471 = vmatprep.subr.bf16.mxu0 %v1918_v9  ;;  %1444 = vmatpush3.bf16.msra.mxu1 %v1928_v15  ;;  %v1988_v32 = vld [vmem:[#allocation9 + $0x38] ss:$12 sps:$4 sm:$0xff]   ;;  %v338_v33 = vpack.c.bf16 %v1984_v31, %v1984_v31  ;;  %v1995_v34 = vld [vmem:[#allocation9 + $0x20] ss:$12 sps:$4 sm:$0xff]   ;;  %s1301_s14 = sshll.u32 %s1838_s13, 4  ;;  %s1302_s14 = int_to_ptr.vmem [resolvable:$true] %s1301_s14 }
  0x43   :  { %1445 = vmatprep.subr.bf16.mxu1 %v2373_v14  ;;  %1439 = vmatprep.mubr.msk.bf16.mxu1 %vm153_vm0, %v1633_v17  ;;  %v100_v39 = vld [vmem:[%s2365_s4] sm:$0x7]  ;;  %s1799_s15 = scalar_lea.vmem %s1302_s14, 128  ;;  %p1804_p7 = scmp.lt.s32.totalorder %s1302_s14, %s1302_s14 }
  0x44   :  { %1322 = vmatmul.mubr.msk.bf16.gmra.mxu0 %vm153_vm0, %v1625_v11  ;;  %v105_v44 = vrot.slane %v100_v39, %v104_v38  ;;  %v109_v46 = vrot.slane %v100_v39, %v108_v41  ;;  %v2045_v48 = vrot.slane %v100_v39, %v112_v42  ;;  %p1800_p6 = scmp.ne.s32.totalorder %s1302_s14, %s1799_s15  ;;  %p1805_p8 = scmp.lt.s32.totalorder %s1799_s15, %s1799_s15 }
  0x45   :  { %472 = vmatpush1.bf16.msra.mxu0 %v1922_v12  ;;  %218 = vmatprep.mubr.bf16.mxu0 %v2371_v1 }
  0x46   :  { %473 = vmatprep.subr.bf16.mxu0 %v1925_v13  ;;  %1446 = vmatpush3.bf16.msra.mxu1 %v1940_v19  ;;  %p1806_p9 = por %p1805_p8, %p1804_p7 }
  0x47   :  { %1447 = vmatprep.subr.bf16.mxu1 %v2373_v14 }
  0x48   :  { %p1807_p10 = pnand %p1806_p9, %p1800_p6 }
  0x49   :  { %474 = vmatpush1.bf16.msra.mxu0 %v1930_v16  ;;  %1440 = vmatmul.mubr.msk.bf16.gmra.mxu1 %vm153_vm0, %v1642_v22 }
  0x4a   :  { %475 = vmatprep.subr.bf16.mxu0 %v1936_v18  ;;  %1448 = vmatpush3.bf16.msra.mxu1 %v1951_v23 }
  0x4b   :  { %1449 = vmatprep.subr.bf16.mxu1 %v2373_v14  ;;  %1459 = vmatprep.mubr.msk.bf16.mxu1 %vm1837_vm1, %v2373_v14 }
  0x4c   :  { %1323 = vmatmul.mubr.msk.bf16.gmra.mxu0 %vm153_vm0, %v1633_v17 }
  0x4d   :  { %476 = vmatpush1.bf16.msra.mxu0 %v1944_v20  ;;  %228 = vmatprep.mubr.bf16.mxu0 %v2371_v1 }
  0x4e   :  { %477 = vmatprep.subr.bf16.mxu0 %v1947_v21  ;;  %1450 = vmatpush3.bf16.msra.mxu1 %v1964_v26 }
  0x4f   :  { %1451 = vmatprep.subr.bf16.mxu1 %v2373_v14 }
  0x51   :  { %478 = vmatpush1.bf16.msra.mxu0 %v1955_v24 }
  0x52   :  { %479 = vmatprep.subr.bf16.mxu0 %v1960_v25  ;;  %1452 = vmatpush3.bf16.msra.mxu1 %v1976_v29 }
  0x53   :  { %1453 = vmatprep.subr.bf16.mxu1 %v2373_v14 }
  0x54   :  { %1324 = vmatmul.mubr.msk.bf16.gmra.mxu0 %vm153_vm0, %v1642_v22 }
  0x55   :  { %480 = vmatpush1.bf16.msra.mxu0 %v1970_v27  ;;  %499 = vmatprep.mubr.bf16.mxu0 %v2371_v1 }
  0x56   :  { %481 = vmatprep.subr.bf16.mxu0 %v1973_v28  ;;  %1454 = vmatpush3.bf16.msra.mxu1 %v1988_v32 }
  0x57   :  { %1455 = vmatprep.subr.bf16.mxu1 %v2373_v14 }
  0x59   :  { %482 = vmatpush1.bf16.msra.mxu0 %v1981_v30 }
  0x5a   :  { %573 = vmatprep.subr.bf16.mxu0 %v1905_v5  ;;  %1456 = vmatpush3.bf16.msra.mxu1 %v1995_v34 }
  0x5b   :  { %1457 = vmatprep.subr.bf16.mxu1 %v2373_v14 }
  0x5c   :  { %500 = vmatmul.mubr.bf16.vlgmr.msra.gmra.mxu0 %v338_v33 }
  0x5d   :  { %574 = vmatpush1.bf16.msra.mxu0 %v1907_v6  ;;  %605 = vmatprep.mubr.bf16.mxu0 %v2371_v1 }
  0x5e   :  { %575 = vmatprep.subr.bf16.mxu0 %v1909_v7  ;;  %1458 = vmatpush3.bf16.msra.mxu1 %v2002_v35 }
  0x5f   :  { %1463 = vmatprep.subr.bf16.mxu1 %v2373_v14 }
  0x61   :  { %576 = vmatpush1.bf16.msra.mxu0 %v1914_v8  ;;  %1460 = vmatmul.mubr.bf16.vlgmr.msra.gmra.mxu1 %v338_v33 }
  0x62   :  { %577 = vmatprep.subr.bf16.mxu0 %v1918_v9  ;;  %1464 = vmatpush3.bf16.msra.mxu1 %v1928_v15 }
  0x63   :  { %1465 = vmatprep.subr.bf16.mxu1 %v2373_v14  ;;  %1479 = vmatprep.mubr.msk.bf16.mxu1 %vm1837_vm1, %v2373_v14 }
  0x65   :  { %578 = vmatpush1.bf16.msra.mxu0 %v1922_v12 }
  0x66   :  { %579 = vmatprep.subr.bf16.mxu0 %v1925_v13  ;;  %1466 = vmatpush3.bf16.msra.mxu1 %v1940_v19 }
  0x67   :  { %1467 = vmatprep.subr.bf16.mxu1 %v2373_v14 }
  0x69   :  { %580 = vmatpush1.bf16.msra.mxu0 %v1930_v16 }
  0x6a   :  { %581 = vmatprep.subr.bf16.mxu0 %v1936_v18  ;;  %1468 = vmatpush3.bf16.msra.mxu1 %v1951_v23 }
  0x6b   :  { %1469 = vmatprep.subr.bf16.mxu1 %v2373_v14 }
  0x6d   :  { %582 = vmatpush1.bf16.msra.mxu0 %v1944_v20 }
  0x6e   :  { %583 = vmatprep.subr.bf16.mxu0 %v1947_v21  ;;  %1470 = vmatpush3.bf16.msra.mxu1 %v1964_v26 }
  0x6f   :  { %1471 = vmatprep.subr.bf16.mxu1 %v2373_v14 }
  0x71   :  { %584 = vmatpush1.bf16.msra.mxu0 %v1955_v24 }
  0x72   :  { %585 = vmatprep.subr.bf16.mxu0 %v1960_v25  ;;  %1472 = vmatpush3.bf16.msra.mxu1 %v1976_v29 }
  0x73   :  { %1473 = vmatprep.subr.bf16.mxu1 %v2373_v14 }
  0x75   :  { %586 = vmatpush1.bf16.msra.mxu0 %v1970_v27 }
  0x76   :  { %587 = vmatprep.subr.bf16.mxu0 %v1973_v28  ;;  %1474 = vmatpush3.bf16.msra.mxu1 %v1988_v32 }
  0x77   :  { %1475 = vmatprep.subr.bf16.mxu1 %v2373_v14 }
  0x79   :  { %588 = vmatpush1.bf16.msra.mxu0 %v1981_v30 }
  0x7a   :  { %673 = vmatprep.subr.bf16.mxu0 %v1905_v5  ;;  %1476 = vmatpush3.bf16.msra.mxu1 %v1995_v34 }
  0x7b   :  { %1477 = vmatprep.subr.bf16.mxu1 %v2373_v14 }
  0x7e   :  { %1478 = vmatpush3.bf16.msra.mxu1 %v2002_v35 }
  0x7f   :  { %1483 = vmatprep.subr.bf16.mxu1 %v2373_v14 }
  0xfc   :  { %v200_v40 = vpop.f32.mrf.mxu0 }
  0xfe   :  { %v202_v43 = vpop.f32.mrf.mxu0 }
 0x100   :  { %v204_v45 = vpop.f32.mrf.mxu0 }
 0x101   :  { %v2043_v47 = vadd.f32 %v204_v45, %v105_v44  ;;  %v1437_v52 = vpop.f32.mrf.mxu1 }
 0x102   :  { %v206_v49 = vpop.f32.mrf.mxu0  ;;  %v2052_v54 = vadd.f32 %v1437_v52, %v2045_v48 }
 0x103   :  { %v2047_v50 = vadd.f32 %v206_v49, %v109_v46  ;;  %v273_v56 = vpop.f32.mrf.mxu1 }
 0x104   :  { %v210_v51 = vpop.f32.mrf.mxu0 }
 0x105   :  { %v2049_v53 = vadd.f32 %v210_v51, %v105_v44  ;;  %v1438_v59 = vpop.f32.mrf.mxu1 }
 0x106   :  { %v212_v55 = vpop.f32.mrf.mxu0  ;;  %v2059_v61 = vadd.f32 %v1438_v59, %v2045_v48 }
 0x107   :  { %v2054_v57 = vadd.f32 %v212_v55, %v109_v46  ;;  %v276_v63 = vpop.f32.mrf.mxu1 }
 0x108   :  { %v214_v58 = vpop.f32.mrf.mxu0  ;;  %v2064_v2 = vadd.f32 %v276_v63, %v2045_v48 }
 0x109   :  { %v2056_v60 = vadd.f32 %v214_v58, %v105_v44  ;;  %v1441_v4 = vpop.f32.mrf.mxu1 }
 0x10a   :  { %v216_v62 = vpop.f32.mrf.mxu0  ;;  %v2069_v11 = vadd.f32 %v1441_v4, %v2045_v48  ;;  %v201_v4 = vadd.f32 %v200_v40, %v105_v44  ;;  %v2097_v40 = vld [vmem:[%s2366_s5] ss:$0 sm:$0xff] }
 0x10b   :  { %v2061_v0 = vadd.f32 %v216_v62, %v109_v46  ;;  %v289_v22 = vpop.f32.mrf.mxu1 }
 0x10c   :  { %v220_v3 = vpop.f32.mrf.mxu0  ;;  %2375 = vst [vmem:[#allocation16_spill] sm:$0xff] %v2069_v11  ;;  %v2074_v36 = vadd.f32 %v289_v22, %v2045_v48 }
 0x10d   :  { %v2066_v10 = vadd.f32 %v220_v3, %v105_v44  ;;  %v1442_v38 = vpop.f32.mrf.mxu1 }
 0x10e   :  { %v222_v17 = vpop.f32.mrf.mxu0  ;;  %v2079_v41 = vadd.f32 %v1442_v38, %v2045_v48 }
 0x10f   :  { %v2071_v33 = vadd.f32 %v222_v17, %v109_v46  ;;  %v292_v45 = vpop.f32.mrf.mxu1 }
 0x110   :  { %v224_v37 = vpop.f32.mrf.mxu0  ;;  %2376 = vst [vmem:[#allocation17_spill] sm:$0xff] %v2079_v41  ;;  %v2084_v51 = vadd.f32 %v292_v45, %v2045_v48  ;;  %v203_v45 = vadd.f32 %v202_v43, %v109_v46  ;;  %v274_v43 = vadd.f32 %v273_v56, %v2045_v48  ;;  %v2378_v48 = vmov 0.0  }
 0x111   :  { %v2076_v39 = vadd.f32 %v224_v37, %v105_v44  ;;  %v2379_v56 = vmov 0  }
 0x112   :  { %v226_v42 = vpop.f32.mrf.mxu0 }
 0x113   :  { %v2081_v49 = vadd.f32 %v226_v42, %v109_v46 }
 0x114   :  { %v230_v52 = vpop.f32.mrf.mxu0 }
 0x115   :  { %v2086_v55 = vadd.f32 %v230_v52, %v105_v44 }
 0x116   :  { %v232_v58 = vpop.f32.mrf.mxu0 }
 0x117   :  { %v2088_v59 = vadd.f32 %v232_v58, %v109_v46 }
 0x118   :  { %v234_v62 = vpop.f32.mrf.mxu0 }
 0x119   :  { %2377 = vst [vmem:[#allocation18_spill] sm:$0xff] %v2088_v59  ;;  %v2090_v63 = vadd.f32 %v234_v62, %v105_v44 }
 0x11a   :  { %v236_v3 = vpop.f32.mrf.mxu0 }
 0x11b   :  { %v2092_v17 = vadd.f32 %v236_v3, %v109_v46 }
 0x11c   :  { %v501_v22 = vpop.f32.mrf.mxu0 }
 0x11d   :  { %v548_v37 = vadd.f32 %v501_v22, %v201_v4 }
 0x11e   :  { %v503_v38 = vpop.f32.mrf.mxu0 }
 0x11f   :  { %v550_v42 = vmul.f32 0.5, %v548_v37  ;;  %v549_v52 = vadd.f32 %v503_v38, %v203_v45 }
 0x120   :  { %v505_v1 = vpop.f32.mrf.mxu0 }
 0x121   :  { %1655 = vtanh.f32 %v550_v42  ;;  %v542_v41 = vpop.f32.mrf.mxu1  ;;  %v551_v11 = vmul.f32 0.5, %v549_v52 }
 0x122   :  { %v506_v14 = vpop.f32.mrf.mxu0  ;;  %v564_v4 = vadd.f32 %v2097_v40, %v542_v41 }
 0x123   :  { %v1461_v58 = vpop.f32.mrf.mxu1  ;;  %1657 = vtanh.f32 %v551_v11 }
 0x125   :  { %v545_v59 = vpop.f32.mrf.mxu1 }
 0x127   :  { %v1462_v62 = vpop.f32.mrf.mxu1 }
 0x12e   :  { %v1656_v44 = vpop.eup %1655 }
 0x12f   :  { %v554_v3 = vadd.f32 1.0, %v1656_v44 }
 0x130   :  { %v1658_v22 = vpop.eup %1657 }
 0x131   :  { %v556_v1 = vmul.f32 0.5, %v554_v3  ;;  %v555_v37 = vadd.f32 1.0, %v1658_v22 }
 0x133   :  { %v565_v14 = vmul.f32 %v564_v4, %v556_v1  ;;  %v557_v59 = vmul.f32 0.5, %v555_v37 }
 0x135   :  { %v566_v46 = vadd.f32 %v565_v14, %v274_v43  ;;  %v568_v11 = vsub.f32 1.0, %v557_v59  ;;  %v570_v42 = vmul.f32 %v557_v59, %v1984_v31 }
 0x137   :  { %1659 = vtanh.f32 %v566_v46 }
 0x144   :  { %v1660_v38 = vpop.eup %1659 }
 0x145   :  { %v569_v45 = vmul.f32 %v1660_v38, %v568_v11 }
 0x147   :  { %v2102_v52 = vadd.f32 %v570_v42, %v569_v45 }
 0x149   :  { %v572_v58 = vpack.c.bf16 %v2102_v52, %v2102_v52 }
 0x14b   :  { %606 = vmatmul.mubr.bf16.vlgmr.msra.gmra.mxu0 %v572_v58  ;;  %1480 = vmatmul.mubr.bf16.vlgmr.msra.gmra.mxu1 %v572_v58 }
 0x14c   :  { %674 = vmatpush1.bf16.msra.mxu0 %v1907_v6  ;;  %1484 = vmatpush3.bf16.msra.mxu1 %v1928_v15 }
 0x14d   :  { %675 = vmatprep.subr.bf16.mxu0 %v1909_v7  ;;  %1485 = vmatprep.subr.bf16.mxu1 %v2378_v48 }
 0x14e   :  { %705 = vmatprep.mubr.bf16.mxu0 %v2379_v56  ;;  %1499 = vmatprep.mubr.msk.bf16.mxu1 %vm1837_vm1, %v2378_v48 }
 0x150   :  { %676 = vmatpush1.bf16.msra.mxu0 %v1914_v8  ;;  %1486 = vmatpush3.bf16.msra.mxu1 %v1940_v19 }
 0x151   :  { %677 = vmatprep.subr.bf16.mxu0 %v1918_v9  ;;  %1487 = vmatprep.subr.bf16.mxu1 %v2378_v48 }
 0x154   :  { %678 = vmatpush1.bf16.msra.mxu0 %v1922_v12  ;;  %1488 = vmatpush3.bf16.msra.mxu1 %v1951_v23 }
 0x155   :  { %679 = vmatprep.subr.bf16.mxu0 %v1925_v13  ;;  %1489 = vmatprep.subr.bf16.mxu1 %v2378_v48 }
 0x158   :  { %680 = vmatpush1.bf16.msra.mxu0 %v1930_v16  ;;  %1490 = vmatpush3.bf16.msra.mxu1 %v1964_v26 }
 0x159   :  { %681 = vmatprep.subr.bf16.mxu0 %v1936_v18  ;;  %1491 = vmatprep.subr.bf16.mxu1 %v2378_v48 }
 0x15c   :  { %682 = vmatpush1.bf16.msra.mxu0 %v1944_v20  ;;  %1492 = vmatpush3.bf16.msra.mxu1 %v1976_v29 }
 0x15d   :  { %683 = vmatprep.subr.bf16.mxu0 %v1947_v21  ;;  %1493 = vmatprep.subr.bf16.mxu1 %v2378_v48 }
 0x160   :  { %684 = vmatpush1.bf16.msra.mxu0 %v1955_v24  ;;  %1494 = vmatpush3.bf16.msra.mxu1 %v1988_v32 }
 0x161   :  { %685 = vmatprep.subr.bf16.mxu0 %v1960_v25  ;;  %1495 = vmatprep.subr.bf16.mxu1 %v2378_v48 }
 0x164   :  { %686 = vmatpush1.bf16.msra.mxu0 %v1970_v27  ;;  %1496 = vmatpush3.bf16.msra.mxu1 %v1995_v34 }
 0x165   :  { %687 = vmatprep.subr.bf16.mxu0 %v1973_v28  ;;  %1497 = vmatprep.subr.bf16.mxu1 %v2378_v48 }
 0x168   :  { %688 = vmatpush1.bf16.msra.mxu0 %v1981_v30  ;;  %1498 = vmatpush3.bf16.msra.mxu1 %v2002_v35 }
 0x169   :  { %773 = vmatprep.subr.bf16.mxu0 %v1905_v5  ;;  %1503 = vmatprep.subr.bf16.mxu1 %v2378_v48 }
 0x20b   :  { %v607_v31 = vpop.f32.mrf.mxu0  ;;  %v648_v41 = vpop.f32.mrf.mxu1 }
 0x20c   :  { %v654_v62 = vadd.f32 %v607_v31, %v2043_v47  ;;  %v664_v42 = vadd.f32 %v2097_v40, %v648_v41 }
 0x20d   :  { %v609_v44 = vpop.f32.mrf.mxu0  ;;  %v1481_v3 = vpop.f32.mrf.mxu1 }
 0x20e   :  { %v656_v4 = vmul.f32 0.5, %v654_v62  ;;  %v655_v22 = vadd.f32 %v609_v44, %v2047_v50 }
 0x20f   :  { %v611_v1 = vpop.f32.mrf.mxu0  ;;  %v651_v43 = vpop.f32.mrf.mxu1 }
 0x210   :  { %1661 = vtanh.f32 %v656_v4  ;;  %v657_v37 = vmul.f32 0.5, %v655_v22 }
 0x211   :  { %v612_v14 = vpop.f32.mrf.mxu0  ;;  %v1482_v46 = vpop.f32.mrf.mxu1 }
 0x212   :  { %1663 = vtanh.f32 %v657_v37 }
 0x21d   :  { %v1662_v59 = vpop.eup %1661 }
 0x21e   :  { %v660_v11 = vadd.f32 1.0, %v1662_v59 }
 0x21f   :  { %v1664_v58 = vpop.eup %1663 }
 0x220   :  { %v662_v38 = vmul.f32 0.5, %v660_v11  ;;  %v661_v31 = vadd.f32 1.0, %v1664_v58 }
 0x222   :  { %v665_v45 = vmul.f32 %v664_v42, %v662_v38  ;;  %v663_v62 = vmul.f32 0.5, %v661_v31 }
 0x224   :  { %v666_v47 = vadd.f32 %v665_v45, %v2064_v2  ;;  %v668_v3 = vsub.f32 1.0, %v663_v62  ;;  %v670_v43 = vmul.f32 %v663_v62, %v2102_v52 }
 0x226   :  { %1665 = vtanh.f32 %v666_v47 }
 0x233   :  { %v1666_v4 = vpop.eup %1665 }
 0x234   :  { %v669_v1 = vmul.f32 %v1666_v4, %v668_v3 }
 0x236   :  { %v2146_v50 = vadd.f32 %v670_v43, %v669_v1 }
 0x238   :  { %v672_v44 = vpack.c.bf16 %v2146_v50, %v2146_v50 }
 0x23a   :  { %706 = vmatmul.mubr.bf16.vlgmr.msra.gmra.mxu0 %v672_v44  ;;  %1500 = vmatmul.mubr.bf16.vlgmr.msra.gmra.mxu1 %v672_v44 }
 0x23b   :  { %774 = vmatpush1.bf16.msra.mxu0 %v1907_v6  ;;  %1504 = vmatpush3.bf16.msra.mxu1 %v1928_v15 }
 0x23c   :  { %775 = vmatprep.subr.bf16.mxu0 %v1909_v7  ;;  %1505 = vmatprep.subr.bf16.mxu1 %v2378_v48 }
 0x23d   :  { %805 = vmatprep.mubr.bf16.mxu0 %v2379_v56  ;;  %1519 = vmatprep.mubr.msk.bf16.mxu1 %vm1837_vm1, %v2378_v48 }
 0x23f   :  { %776 = vmatpush1.bf16.msra.mxu0 %v1914_v8  ;;  %1506 = vmatpush3.bf16.msra.mxu1 %v1940_v19 }
 0x240   :  { %777 = vmatprep.subr.bf16.mxu0 %v1918_v9  ;;  %1507 = vmatprep.subr.bf16.mxu1 %v2378_v48 }
 0x243   :  { %778 = vmatpush1.bf16.msra.mxu0 %v1922_v12  ;;  %1508 = vmatpush3.bf16.msra.mxu1 %v1951_v23 }
 0x244   :  { %779 = vmatprep.subr.bf16.mxu0 %v1925_v13  ;;  %1509 = vmatprep.subr.bf16.mxu1 %v2378_v48 }
 0x247   :  { %780 = vmatpush1.bf16.msra.mxu0 %v1930_v16  ;;  %1510 = vmatpush3.bf16.msra.mxu1 %v1964_v26 }
 0x248   :  { %781 = vmatprep.subr.bf16.mxu0 %v1936_v18  ;;  %1511 = vmatprep.subr.bf16.mxu1 %v2378_v48 }
 0x24b   :  { %782 = vmatpush1.bf16.msra.mxu0 %v1944_v20  ;;  %1512 = vmatpush3.bf16.msra.mxu1 %v1976_v29 }
 0x24c   :  { %783 = vmatprep.subr.bf16.mxu0 %v1947_v21  ;;  %1513 = vmatprep.subr.bf16.mxu1 %v2378_v48 }
 0x24f   :  { %784 = vmatpush1.bf16.msra.mxu0 %v1955_v24  ;;  %1514 = vmatpush3.bf16.msra.mxu1 %v1988_v32 }
 0x250   :  { %785 = vmatprep.subr.bf16.mxu0 %v1960_v25  ;;  %1515 = vmatprep.subr.bf16.mxu1 %v2378_v48 }
 0x253   :  { %786 = vmatpush1.bf16.msra.mxu0 %v1970_v27  ;;  %1516 = vmatpush3.bf16.msra.mxu1 %v1995_v34 }
 0x254   :  { %787 = vmatprep.subr.bf16.mxu0 %v1973_v28  ;;  %1517 = vmatprep.subr.bf16.mxu1 %v2378_v48 }
 0x257   :  { %788 = vmatpush1.bf16.msra.mxu0 %v1981_v30  ;;  %1518 = vmatpush3.bf16.msra.mxu1 %v2002_v35 }
 0x258   :  { %873 = vmatprep.subr.bf16.mxu0 %v1905_v5  ;;  %1523 = vmatprep.subr.bf16.mxu1 %v2378_v48 }
 0x2fa   :  { %v707_v2 = vpop.f32.mrf.mxu0  ;;  %v748_v52 = vpop.f32.mrf.mxu1 }
 0x2fb   :  { %v754_v41 = vadd.f32 %v707_v2, %v2049_v53  ;;  %v764_v62 = vadd.f32 %v2097_v40, %v748_v52 }
 0x2fc   :  { %v709_v14 = vpop.f32.mrf.mxu0  ;;  %v1501_v46 = vpop.f32.mrf.mxu1 }
 0x2fd   :  { %v756_v22 = vmul.f32 0.5, %v754_v41  ;;  %v755_v42 = vadd.f32 %v709_v14, %v2054_v57 }
 0x2fe   :  { %v711_v37 = vpop.f32.mrf.mxu0  ;;  %v751_v59 = vpop.f32.mrf.mxu1 }
 0x2ff   :  { %1667 = vtanh.f32 %v756_v22  ;;  %v757_v45 = vmul.f32 0.5, %v755_v42 }
 0x300   :  { %v712_v11 = vpop.f32.mrf.mxu0  ;;  %v1502_v38 = vpop.f32.mrf.mxu1 }
 0x301   :  { %1669 = vtanh.f32 %v757_v45 }
 0x30c   :  { %v1668_v47 = vpop.eup %1667 }
 0x30d   :  { %v760_v58 = vadd.f32 1.0, %v1668_v47 }
 0x30e   :  { %v1670_v4 = vpop.eup %1669 }
 0x30f   :  { %v762_v31 = vmul.f32 0.5, %v760_v58  ;;  %v761_v1 = vadd.f32 1.0, %v1670_v4 }
 0x311   :  { %v765_v3 = vmul.f32 %v764_v62, %v762_v31  ;;  %v763_v43 = vmul.f32 0.5, %v761_v1 }
 0x313   :  { %v766_v53 = vadd.f32 %v765_v3, %v2052_v54  ;;  %v768_v44 = vsub.f32 1.0, %v763_v43  ;;  %v770_v46 = vmul.f32 %v763_v43, %v2146_v50 }
 0x315   :  { %1671 = vtanh.f32 %v766_v53 }
 0x322   :  { %v1672_v2 = vpop.eup %1671 }
 0x323   :  { %v769_v41 = vmul.f32 %v1672_v2, %v768_v44 }
 0x325   :  { %v2190_v57 = vadd.f32 %v770_v46, %v769_v41 }
 0x327   :  { %v772_v14 = vpack.c.bf16 %v2190_v57, %v2190_v57 }
 0x329   :  { %806 = vmatmul.mubr.bf16.vlgmr.msra.gmra.mxu0 %v772_v14  ;;  %1520 = vmatmul.mubr.bf16.vlgmr.msra.gmra.mxu1 %v772_v14 }
 0x32a   :  { %874 = vmatpush1.bf16.msra.mxu0 %v1907_v6  ;;  %1524 = vmatpush3.bf16.msra.mxu1 %v1928_v15 }
 0x32b   :  { %875 = vmatprep.subr.bf16.mxu0 %v1909_v7  ;;  %1525 = vmatprep.subr.bf16.mxu1 %v2378_v48 }
 0x32c   :  { %905 = vmatprep.mubr.bf16.mxu0 %v2379_v56  ;;  %1539 = vmatprep.mubr.msk.bf16.mxu1 %vm1837_vm1, %v2378_v48 }
 0x32e   :  { %876 = vmatpush1.bf16.msra.mxu0 %v1914_v8  ;;  %1526 = vmatpush3.bf16.msra.mxu1 %v1940_v19 }
 0x32f   :  { %877 = vmatprep.subr.bf16.mxu0 %v1918_v9  ;;  %1527 = vmatprep.subr.bf16.mxu1 %v2378_v48 }
 0x332   :  { %878 = vmatpush1.bf16.msra.mxu0 %v1922_v12  ;;  %1528 = vmatpush3.bf16.msra.mxu1 %v1951_v23 }
 0x333   :  { %879 = vmatprep.subr.bf16.mxu0 %v1925_v13  ;;  %1529 = vmatprep.subr.bf16.mxu1 %v2378_v48 }
 0x336   :  { %880 = vmatpush1.bf16.msra.mxu0 %v1930_v16  ;;  %1530 = vmatpush3.bf16.msra.mxu1 %v1964_v26 }
 0x337   :  { %881 = vmatprep.subr.bf16.mxu0 %v1936_v18  ;;  %1531 = vmatprep.subr.bf16.mxu1 %v2378_v48 }
 0x33a   :  { %882 = vmatpush1.bf16.msra.mxu0 %v1944_v20  ;;  %1532 = vmatpush3.bf16.msra.mxu1 %v1976_v29 }
 0x33b   :  { %883 = vmatprep.subr.bf16.mxu0 %v1947_v21  ;;  %1533 = vmatprep.subr.bf16.mxu1 %v2378_v48 }
 0x33e   :  { %884 = vmatpush1.bf16.msra.mxu0 %v1955_v24  ;;  %1534 = vmatpush3.bf16.msra.mxu1 %v1988_v32 }
 0x33f   :  { %885 = vmatprep.subr.bf16.mxu0 %v1960_v25  ;;  %1535 = vmatprep.subr.bf16.mxu1 %v2378_v48 }
 0x342   :  { %886 = vmatpush1.bf16.msra.mxu0 %v1970_v27  ;;  %1536 = vmatpush3.bf16.msra.mxu1 %v1995_v34 }
 0x343   :  { %887 = vmatprep.subr.bf16.mxu0 %v1973_v28  ;;  %1537 = vmatprep.subr.bf16.mxu1 %v2378_v48 }
 0x346   :  { %888 = vmatpush1.bf16.msra.mxu0 %v1981_v30  ;;  %1538 = vmatpush3.bf16.msra.mxu1 %v2002_v35 }
 0x347   :  { %973 = vmatprep.subr.bf16.mxu0 %v1905_v5  ;;  %1543 = vmatprep.subr.bf16.mxu1 %v2378_v48 }
 0x3e9   :  { %v807_v54 = vpop.f32.mrf.mxu0  ;;  %v848_v50 = vpop.f32.mrf.mxu1 }
 0x3ea   :  { %v854_v52 = vadd.f32 %v807_v54, %v2056_v60  ;;  %v864_v53 = vadd.f32 %v2097_v40, %v848_v50 }
 0x3eb   :  { %v809_v22 = vpop.f32.mrf.mxu0  ;;  %v1521_v37 = vpop.f32.mrf.mxu1 }
 0x3ec   :  { %v856_v59 = vmul.f32 0.5, %v854_v52  ;;  %v855_v47 = vadd.f32 %v809_v22, %v2061_v0 }
 0x3ed   :  { %v811_v11 = vpop.f32.mrf.mxu0  ;;  %v851_v38 = vpop.f32.mrf.mxu1 }
 0x3ee   :  { %1673 = vtanh.f32 %v856_v59  ;;  %v857_v58 = vmul.f32 0.5, %v855_v47 }
 0x3ef   :  { %v812_v42 = vpop.f32.mrf.mxu0  ;;  %v1522_v45 = vpop.f32.mrf.mxu1 }
 0x3f0   :  { %1675 = vtanh.f32 %v857_v58 }
 0x3fb   :  { %v1674_v31 = vpop.eup %1673 }
 0x3fc   :  { %v860_v62 = vadd.f32 1.0, %v1674_v31 }
 0x3fd   :  { %v1676_v1 = vpop.eup %1675 }
 0x3fe   :  { %v862_v3 = vmul.f32 0.5, %v860_v62  ;;  %v861_v43 = vadd.f32 1.0, %v1676_v1 }
 0x400   :  { %v865_v4 = vmul.f32 %v864_v53, %v862_v3  ;;  %v863_v44 = vmul.f32 0.5, %v861_v43 }
 0x402   :  { %v866_v60 = vadd.f32 %v865_v4, %v2059_v61  ;;  %v868_v2 = vsub.f32 1.0, %v863_v44  ;;  %v870_v14 = vmul.f32 %v863_v44, %v2190_v57 }
 0x404   :  { %1677 = vtanh.f32 %v866_v60 }
 0x411   :  { %v1678_v41 = vpop.eup %1677 }
 0x412   :  { %v869_v46 = vmul.f32 %v1678_v41, %v868_v2 }
 0x414   :  { %v2234_v0 = vadd.f32 %v870_v14, %v869_v46 }
 0x416   :  { %v872_v54 = vpack.c.bf16 %v2234_v0, %v2234_v0 }
 0x418   :  { %906 = vmatmul.mubr.bf16.vlgmr.msra.gmra.mxu0 %v872_v54  ;;  %1540 = vmatmul.mubr.bf16.vlgmr.msra.gmra.mxu1 %v872_v54 }
 0x419   :  { %974 = vmatpush1.bf16.msra.mxu0 %v1907_v6  ;;  %1544 = vmatpush3.bf16.msra.mxu1 %v1928_v15 }
 0x41a   :  { %975 = vmatprep.subr.bf16.mxu0 %v1909_v7  ;;  %1545 = vmatprep.subr.bf16.mxu1 %v2378_v48 }
 0x41b   :  { %1005 = vmatprep.mubr.bf16.mxu0 %v2379_v56  ;;  %1559 = vmatprep.mubr.msk.bf16.mxu1 %vm1837_vm1, %v2378_v48 }
 0x41d   :  { %976 = vmatpush1.bf16.msra.mxu0 %v1914_v8  ;;  %1546 = vmatpush3.bf16.msra.mxu1 %v1940_v19 }
 0x41e   :  { %977 = vmatprep.subr.bf16.mxu0 %v1918_v9  ;;  %1547 = vmatprep.subr.bf16.mxu1 %v2378_v48 }
 0x421   :  { %978 = vmatpush1.bf16.msra.mxu0 %v1922_v12  ;;  %1548 = vmatpush3.bf16.msra.mxu1 %v1951_v23 }
 0x422   :  { %979 = vmatprep.subr.bf16.mxu0 %v1925_v13  ;;  %1549 = vmatprep.subr.bf16.mxu1 %v2378_v48 }
 0x425   :  { %980 = vmatpush1.bf16.msra.mxu0 %v1930_v16  ;;  %1550 = vmatpush3.bf16.msra.mxu1 %v1964_v26 }
 0x426   :  { %981 = vmatprep.subr.bf16.mxu0 %v1936_v18  ;;  %1551 = vmatprep.subr.bf16.mxu1 %v2378_v48 }
 0x429   :  { %982 = vmatpush1.bf16.msra.mxu0 %v1944_v20  ;;  %1552 = vmatpush3.bf16.msra.mxu1 %v1976_v29 }
 0x42a   :  { %983 = vmatprep.subr.bf16.mxu0 %v1947_v21  ;;  %1553 = vmatprep.subr.bf16.mxu1 %v2378_v48 }
 0x42d   :  { %984 = vmatpush1.bf16.msra.mxu0 %v1955_v24  ;;  %1554 = vmatpush3.bf16.msra.mxu1 %v1988_v32 }
 0x42e   :  { %985 = vmatprep.subr.bf16.mxu0 %v1960_v25  ;;  %1555 = vmatprep.subr.bf16.mxu1 %v2378_v48 }
 0x431   :  { %986 = vmatpush1.bf16.msra.mxu0 %v1970_v27  ;;  %1556 = vmatpush3.bf16.msra.mxu1 %v1995_v34 }
 0x432   :  { %987 = vmatprep.subr.bf16.mxu0 %v1973_v28  ;;  %1557 = vmatprep.subr.bf16.mxu1 %v2378_v48 }
 0x435   :  { %988 = vmatpush1.bf16.msra.mxu0 %v1981_v30  ;;  %1558 = vmatpush3.bf16.msra.mxu1 %v2002_v35 }
 0x436   :  { %1073 = vmatprep.subr.bf16.mxu0 %v1905_v5  ;;  %1563 = vmatprep.subr.bf16.mxu1 %v2378_v48 }
 0x4d8   :  { %v907_v61 = vpop.f32.mrf.mxu0  ;;  %v948_v57 = vpop.f32.mrf.mxu1 }
 0x4d9   :  { %v954_v50 = vadd.f32 %v907_v61, %v2066_v10  ;;  %v964_v62 = vadd.f32 %v2097_v40, %v948_v57 }
 0x4da   :  { %v909_v52 = vpop.f32.mrf.mxu0  ;;  %v1541_v22 = vpop.f32.mrf.mxu1 }
 0x4db   :  { %v956_v37 = vmul.f32 0.5, %v954_v50  ;;  %v955_v45 = vadd.f32 %v909_v52, %v2071_v33 }
 0x4dc   :  { %v911_v59 = vpop.f32.mrf.mxu0  ;;  %v951_v11 = vpop.f32.mrf.mxu1 }
 0x4dd   :  { %1679 = vtanh.f32 %v956_v37  ;;  %v957_v47 = vmul.f32 0.5, %v955_v45  ;;  %v1704_v59 = vld [vmem:[#allocation9 + $0xa8] ss:$12 sps:$4 sm:$0xff]   ;;  %v1705_v11 = vld [vmem:[#allocation9 + $0xb0] ss:$12 sps:$4 sm:$0xff]  }
 0x4de   :  { %v912_v38 = vpop.f32.mrf.mxu0  ;;  %v1542_v42 = vpop.f32.mrf.mxu1  ;;  %v1709_v45 = vld [vmem:[#allocation9 + $0x7c] ss:$12 sps:$4 sm:$0xff]  }
 0x4df   :  { %1681 = vtanh.f32 %v957_v47  ;;  %v1707_v38 = vld [vmem:[#allocation9 + $0x90] ss:$12 sps:$4 sm:$0xff]   ;;  %v1708_v42 = vld [vmem:[#allocation9 + $0x98] ss:$12 sps:$4 sm:$0xff]  }
 0x4e0   :  { %v1710_v47 = vld [vmem:[#allocation9 + $0x78] ss:$12 sps:$4 sm:$0xff]  }
 0x4ea   :  { %v1680_v58 = vpop.eup %1679 }
 0x4eb   :  { %v960_v5 = vadd.f32 1.0, %v1680_v58  ;;  %v1711_v58 = vld [vmem:[#allocation9 + $0x80] ss:$12 sps:$4 sm:$0xff]  }
 0x4ec   :  { %v1682_v53 = vpop.eup %1681 }
 0x4ed   :  { %v962_v31 = vmul.f32 0.5, %v960_v5  ;;  %v961_v4 = vadd.f32 1.0, %v1682_v53  ;;  %v1712_v5 = vld [vmem:[#allocation9 + $0x64] ss:$12 sps:$4 sm:$0xff]   ;;  %v1718_v53 = vld [vmem:[#allocation9 + $0x1c] ss:$12 sps:$4 sm:$0xff]  }
 0x4ef   :  { %v965_v3 = vmul.f32 %v964_v62, %v962_v31  ;;  %v963_v60 = vmul.f32 0.5, %v961_v4  ;;  %v1714_v31 = vld [vmem:[#allocation9 + $0x4c] ss:$12 sps:$4 sm:$0xff]   ;;  %v1715_v62 = vld [vmem:[#allocation9 + $0x48] ss:$12 sps:$4 sm:$0xff]  }
 0x4f1   :  { %v966_v10 = vadd.f32 %v965_v3, %v2074_v36  ;;  %v968_v1 = vsub.f32 1.0, %v963_v60  ;;  %v970_v2 = vmul.f32 %v963_v60, %v2234_v0  ;;  %v1716_v3 = vld [vmem:[#allocation9 + $0x34] ss:$12 sps:$4 sm:$0xff]  }
 0x4f3   :  { %1683 = vtanh.f32 %v966_v10  ;;  %v1717_v10 = vld [vmem:[#allocation9 + $0x30] ss:$12 sps:$4 sm:$0xff]  }
 0x500   :  { %v1684_v43 = vpop.eup %1683 }
 0x501   :  { %v969_v44 = vmul.f32 %v1684_v43, %v968_v1 }
 0x503   :  { %v2278_v33 = vadd.f32 %v970_v2, %v969_v44  ;;  %v2380_v2 = vld [vmem:[#allocation18_spill] sm:$0xff] }
 0x505   :  { %v972_v41 = vpack.c.bf16 %v2278_v33, %v2278_v33 }
 0x507   :  { %1006 = vmatmul.mubr.bf16.vlgmr.msra.gmra.mxu0 %v972_v41  ;;  %1560 = vmatmul.mubr.bf16.vlgmr.msra.gmra.mxu1 %v972_v41 }
 0x508   :  { %1074 = vmatpush1.bf16.msra.mxu0 %v1907_v6  ;;  %1564 = vmatpush3.bf16.msra.mxu1 %v1928_v15  ;;  %v1703_v6 = vld [vmem:[#allocation9 + $0xac] ss:$12 sps:$4 sm:$0xff]  }
 0x509   :  { %1075 = vmatprep.subr.bf16.mxu0 %v1909_v7  ;;  %1565 = vmatprep.subr.bf16.mxu1 %v2378_v48 }
 0x50a   :  { %1105 = vmatprep.mubr.bf16.mxu0 %v2379_v56  ;;  %1579 = vmatprep.mubr.msk.bf16.mxu1 %vm1837_vm1, %v2378_v48 }
 0x50c   :  { %1076 = vmatpush1.bf16.msra.mxu0 %v1914_v8  ;;  %1566 = vmatpush3.bf16.msra.mxu1 %v1940_v19 }
 0x50d   :  { %1077 = vmatprep.subr.bf16.mxu0 %v1918_v9  ;;  %1567 = vmatprep.subr.bf16.mxu1 %v2378_v48 }
 0x510   :  { %1078 = vmatpush1.bf16.msra.mxu0 %v1922_v12  ;;  %1568 = vmatpush3.bf16.msra.mxu1 %v1951_v23 }
 0x511   :  { %1079 = vmatprep.subr.bf16.mxu0 %v1925_v13  ;;  %1569 = vmatprep.subr.bf16.mxu1 %v2378_v48 }
 0x514   :  { %1080 = vmatpush1.bf16.msra.mxu0 %v1930_v16  ;;  %1570 = vmatpush3.bf16.msra.mxu1 %v1964_v26 }
 0x515   :  { %1081 = vmatprep.subr.bf16.mxu0 %v1936_v18  ;;  %1571 = vmatprep.subr.bf16.mxu1 %v2378_v48 }
 0x518   :  { %1082 = vmatpush1.bf16.msra.mxu0 %v1944_v20  ;;  %1572 = vmatpush3.bf16.msra.mxu1 %v1976_v29 }
 0x519   :  { %1083 = vmatprep.subr.bf16.mxu0 %v1947_v21  ;;  %1573 = vmatprep.subr.bf16.mxu1 %v2378_v48 }
 0x51c   :  { %1084 = vmatpush1.bf16.msra.mxu0 %v1955_v24  ;;  %1574 = vmatpush3.bf16.msra.mxu1 %v1988_v32 }
 0x51d   :  { %1085 = vmatprep.subr.bf16.mxu0 %v1960_v25  ;;  %1575 = vmatprep.subr.bf16.mxu1 %v2378_v48 }
 0x520   :  { %1086 = vmatpush1.bf16.msra.mxu0 %v1970_v27  ;;  %1576 = vmatpush3.bf16.msra.mxu1 %v1995_v34 }
 0x521   :  { %1087 = vmatprep.subr.bf16.mxu0 %v1973_v28  ;;  %1577 = vmatprep.subr.bf16.mxu1 %v2378_v48 }
 0x524   :  { %1088 = vmatpush1.bf16.msra.mxu0 %v1981_v30  ;;  %1578 = vmatpush3.bf16.msra.mxu1 %v2002_v35 }
 0x525   :  { %1173 = vmatprep.subr.bf16.mxu0 %v1703_v6  ;;  %1583 = vmatprep.subr.bf16.mxu1 %v2378_v48 }
 0x5c7   :  { %v1007_v7 = vpop.f32.mrf.mxu0  ;;  %v1048_v8 = vpop.f32.mrf.mxu1 }
 0x5c8   :  { %v1054_v9 = vadd.f32 %v1007_v7, %v2076_v39  ;;  %v1064_v46 = vadd.f32 %v2097_v40, %v1048_v8  ;;  %v2381_v7 = vld [vmem:[#allocation16_spill] sm:$0xff] }
 0x5c9   :  { %v1009_v12 = vpop.f32.mrf.mxu0  ;;  %v1561_v13 = vpop.f32.mrf.mxu1 }
 0x5ca   :  { %v1056_v15 = vmul.f32 0.5, %v1054_v9  ;;  %v1055_v21 = vadd.f32 %v1009_v12, %v2081_v49 }
 0x5cb   :  { %v1011_v16 = vpop.f32.mrf.mxu0  ;;  %v1051_v18 = vpop.f32.mrf.mxu1 }
 0x5cc   :  { %1685 = vtanh.f32 %v1056_v15  ;;  %v1057_v23 = vmul.f32 0.5, %v1055_v21 }
 0x5cd   :  { %v1012_v19 = vpop.f32.mrf.mxu0  ;;  %v1562_v20 = vpop.f32.mrf.mxu1 }
 0x5ce   :  { %1687 = vtanh.f32 %v1057_v23 }
 0x5d9   :  { %v1686_v24 = vpop.eup %1685 }
 0x5da   :  { %v1060_v25 = vadd.f32 1.0, %v1686_v24 }
 0x5db   :  { %v1688_v0 = vpop.eup %1687 }
 0x5dc   :  { %v1062_v36 = vmul.f32 0.5, %v1060_v25  ;;  %v1061_v54 = vadd.f32 1.0, %v1688_v0 }
 0x5de   :  { %v1065_v14 = vmul.f32 %v1064_v46, %v1062_v36  ;;  %v1063_v61 = vmul.f32 0.5, %v1061_v54 }
 0x5e0   :  { %v1066_v39 = vadd.f32 %v1065_v14, %v2084_v51  ;;  %v1068_v57 = vsub.f32 1.0, %v1063_v61  ;;  %v1070_v22 = vmul.f32 %v1063_v61, %v2278_v33  ;;  %v1706_v51 = vld [vmem:[#allocation9 + $0x94] ss:$12 sps:$4 sm:$0xff]  }
 0x5e2   :  { %1689 = vtanh.f32 %v1066_v39 }
 0x5ef   :  { %v1690_v50 = vpop.eup %1689 }
 0x5f0   :  { %v1069_v52 = vmul.f32 %v1690_v50, %v1068_v57 }
 0x5f2   :  { %v2321_v49 = vadd.f32 %v1070_v22, %v1069_v52 }
 0x5f4   :  { %v1072_v37 = vpack.c.bf16 %v2321_v49, %v2321_v49 }
 0x5f6   :  { %1106 = vmatmul.mubr.bf16.vlgmr.msra.gmra.mxu0 %v1072_v37  ;;  %1580 = vmatmul.mubr.bf16.vlgmr.msra.gmra.mxu1 %v1072_v37 }
 0x5f7   :  { %1174 = vmatpush1.bf16.msra.mxu0 %v1704_v59  ;;  %1584 = vmatpush3.bf16.msra.mxu1 %v1705_v11  ;;  %v2382_v59 = vld [vmem:[#allocation17_spill] sm:$0xff] }
 0x5f8   :  { %1175 = vmatprep.subr.bf16.mxu0 %v1706_v51  ;;  %1585 = vmatprep.subr.bf16.mxu1 %v2378_v48 }
 0x5f9   :  { %1205 = vmatprep.mubr.bf16.mxu0 %v2379_v56  ;;  %1599 = vmatprep.mubr.msk.bf16.mxu1 %vm1837_vm1, %v2378_v48  ;;  %v1713_v56 = vld [vmem:[#allocation9 + $0x60] ss:$12 sps:$4 sm:$0xff]  }
 0x5fb   :  { %1176 = vmatpush1.bf16.msra.mxu0 %v1707_v38  ;;  %1586 = vmatpush3.bf16.msra.mxu1 %v1708_v42 }
 0x5fc   :  { %1177 = vmatprep.subr.bf16.mxu0 %v1709_v45  ;;  %1587 = vmatprep.subr.bf16.mxu1 %v2378_v48 }
 0x5ff   :  { %1178 = vmatpush1.bf16.msra.mxu0 %v1710_v47  ;;  %1588 = vmatpush3.bf16.msra.mxu1 %v1711_v58 }
 0x600   :  { %1179 = vmatprep.subr.bf16.mxu0 %v1712_v5  ;;  %1589 = vmatprep.subr.bf16.mxu1 %v2378_v48 }
 0x603   :  { %1180 = vmatpush1.bf16.msra.mxu0 %v1713_v56  ;;  %1590 = vmatpush3.bf16.msra.mxu1 %v1964_v26 }
 0x604   :  { %1181 = vmatprep.subr.bf16.mxu0 %v1714_v31  ;;  %1591 = vmatprep.subr.bf16.mxu1 %v2378_v48 }
 0x607   :  { %1182 = vmatpush1.bf16.msra.mxu0 %v1715_v62  ;;  %1592 = vmatpush3.bf16.msra.mxu1 %v1976_v29 }
 0x608   :  { %1183 = vmatprep.subr.bf16.mxu0 %v1716_v3  ;;  %1593 = vmatprep.subr.bf16.mxu1 %v2378_v48 }
 0x60b   :  { %1184 = vmatpush1.bf16.msra.mxu0 %v1717_v10  ;;  %1594 = vmatpush3.bf16.msra.mxu1 %v1988_v32 }
 0x60c   :  { %1185 = vmatprep.subr.bf16.mxu0 %v1718_v53  ;;  %1595 = vmatprep.subr.bf16.mxu1 %v2378_v48 }
 0x60f   :  { %1186 = vmatpush1.bf16.msra.mxu0 %v1970_v27  ;;  %1596 = vmatpush3.bf16.msra.mxu1 %v1995_v34 }
 0x610   :  { %1187 = vmatprep.subr.bf16.mxu0 %v1973_v28  ;;  %1597 = vmatprep.subr.bf16.mxu1 %v2378_v48 }
 0x613   :  { %1188 = vmatpush1.bf16.msra.mxu0 %v1981_v30  ;;  %1598 = vmatpush3.bf16.msra.mxu1 %v2002_v35 }
 0x6b6   :  { %v1107_v26 = vpop.f32.mrf.mxu0  ;;  %v1148_v29 = vpop.f32.mrf.mxu1 }
 0x6b7   :  { %v1154_v32 = vadd.f32 %v1107_v26, %v2086_v55  ;;  %v1164_v35 = vadd.f32 %v2097_v40, %v1148_v29 }
 0x6b8   :  { %v1109_v4 = vpop.f32.mrf.mxu0  ;;  %v1581_v60 = vpop.f32.mrf.mxu1 }
 0x6b9   :  { %v1156_v1 = vmul.f32 0.5, %v1154_v32  ;;  %v1155_v28 = vadd.f32 %v1109_v4, %v2380_v2 }
 0x6ba   :  { %v1111_v43 = vpop.f32.mrf.mxu0  ;;  %v1151_v44 = vpop.f32.mrf.mxu1 }
 0x6bb   :  { %1691 = vtanh.f32 %v1156_v1  ;;  %v1157_v33 = vmul.f32 0.5, %v1155_v28 }
 0x6bc   :  { %v1112_v27 = vpop.f32.mrf.mxu0  ;;  %v1582_v34 = vpop.f32.mrf.mxu1 }
 0x6bd   :  { %1693 = vtanh.f32 %v1157_v33 }
 0x6c8   :  { %v1692_v48 = vpop.eup %1691 }
 0x6c9   :  { %v1160_v30 = vadd.f32 1.0, %v1692_v48 }
 0x6ca   :  { %v1694_v8 = vpop.eup %1693 }
 0x6cb   :  { %v1162_v41 = vmul.f32 0.5, %v1160_v30  ;;  %v1161_v9 = vadd.f32 1.0, %v1694_v8 }
 0x6cd   :  { %v1165_v6 = vmul.f32 %v1164_v35, %v1162_v41  ;;  %v1163_v12 = vmul.f32 0.5, %v1161_v9 }
 0x6cf   :  { %v1166_v55 = vadd.f32 %v1165_v6, %v2381_v7  ;;  %v1168_v13 = vsub.f32 1.0, %v1163_v12  ;;  %v1170_v18 = vmul.f32 %v1163_v12, %v2321_v49 }
 0x6d1   :  { %1695 = vtanh.f32 %v1166_v55 }
 0x6de   :  { %v1696_v15 = vpop.eup %1695 }
 0x6df   :  { %v1169_v16 = vmul.f32 %v1696_v15, %v1168_v13 }
 0x6e1   :  { %v1171_v19 = vadd.f32 %v1170_v18, %v1169_v16 }
 0x6e3   :  { %v1172_v20 = vpack.c.bf16 %v1171_v19, %v1171_v19 }
 0x6e5   :  { %1206 = vmatmul.mubr.bf16.vlgmr.msra.gmra.mxu0 %v1172_v20  ;;  %1600 = vmatmul.mubr.bf16.vlgmr.msra.gmra.mxu1 %v1172_v20 }
 0x7a5   :  { %v1207_v21 = vpop.f32.mrf.mxu0  ;;  %v1248_v23 = vpop.f32.mrf.mxu1 }
 0x7a6   :  { %v1254_v24 = vadd.f32 %v1207_v21, %v2090_v63  ;;  %v1264_v49 = vadd.f32 %v2097_v40, %v1248_v23 }
 0x7a7   :  { %v1209_v25 = vpop.f32.mrf.mxu0  ;;  %v1601_v36 = vpop.f32.mrf.mxu1 }
 0x7a8   :  { %v1256_v46 = vmul.f32 0.5, %v1254_v24  ;;  %v1255_v61 = vadd.f32 %v1209_v25, %v2092_v17  ;;  %v1354_v17 = vld [vmem:[%s2367_s6] ss:$0 sm:$0xff] }
 0x7a9   :  { %v1211_v14 = vpop.f32.mrf.mxu0  ;;  %v1251_v39 = vpop.f32.mrf.mxu1 }
 0x7aa   :  { %1697 = vtanh.f32 %v1256_v46  ;;  %v1257_v57 = vmul.f32 0.5, %v1255_v61 }
 0x7ab   :  { %v1212_v0 = vpop.f32.mrf.mxu0  ;;  %v1602_v54 = vpop.f32.mrf.mxu1 }
 0x7ac   :  { %1699 = vtanh.f32 %v1257_v57 }
 0x7b7   :  { %v1698_v50 = vpop.eup %1697 }
 0x7b8   :  { %v1260_v52 = vadd.f32 1.0, %v1698_v50 }
 0x7b9   :  { %v1700_v11 = vpop.eup %1699 }
 0x7ba   :  { %v1262_v22 = vmul.f32 0.5, %v1260_v52  ;;  %v1261_v51 = vadd.f32 1.0, %v1700_v11 }
 0x7bc   :  { %v1265_v37 = vmul.f32 %v1264_v49, %v1262_v22  ;;  %v1263_v38 = vmul.f32 0.5, %v1261_v51 }
 0x7be   :  { %v1266_v63 = vadd.f32 %v1265_v37, %v2382_v59  ;;  %v1268_v42 = vsub.f32 1.0, %v1263_v38  ;;  %v1270_v58 = vmul.f32 %v1263_v38, %v1171_v19 }
 0x7c0   :  { %1701 = vtanh.f32 %v1266_v63 }
 0x7cd   :  { %v1702_v45 = vpop.eup %1701 }
 0x7ce   :  { %v1269_v47 = vmul.f32 %v1702_v45, %v1268_v42 }
 0x7d0   :  { %v1271_v5 = vadd.f32 %v1270_v58, %v1269_v47 }
 0x7d2   :  { %v1280_v56 = vmul.f32 %v1354_v17, %v1271_v5  ;;  %1272 = vst [vmem:[#allocation11] sm:$0xff] %v1271_v5 }
 0x7d4   :  { %1281 = vadd.xlane.f32.xlu0 %v1280_v56 }
 0x7d5   :  { %1810 = shalt.err (!%p1807_p10)
}
 0x7d6   :  { %1304 = dma.vmem_to_hbm [thread:$0]  %s1302_s14, 128, %s2370_s9, [#allocation5]   ;;  %v1355_v40 = vld [vmem:[#allocation2] ss:$0 sm:$0xff]  ;;  %vm1291_vm2 = vcmask 7168  }
 0x85d   :  { %v1282_v31 = vpop.xlane.xlu0 %1281 }
 0x85e   :  { %v1290_v62 = vadd.f32 %v1355_v40, %v1282_v31 }
 0x860   :  { %1292 = vst.msk [vmem:[%s2369_s8] sm:$0xff] %vm1291_vm2, %v1290_v62 }
 0x861   :  { %1825 = dma.done.wait [#allocation5], 128  }
 0x862   :  { %1826 = vsyncadd [#allocation5], 4294967168 }
 0x863   :  { %1310 = vsyncpa [#allocation4], 1 }
 0x864   :  { %1311 = vsyncpa [#allocation7], 1 }
 0x865   :  { %1312 = vsyncpa [#allocation10], 1 }
 0x866   :  { %1313 = vsyncpa [#allocation5], 1 }

</bundles_post_ra>
